<compile_context>
chip_gen: v7x
topology: tpu7x:2x2x1
jax: 0.10.0
libtpu: 0.0.40
codegen_flags: <defaults>
</compile_context>

<pallas_src>
import jax
import jax.numpy as jnp
from jax.experimental import pallas as pl
from jax.experimental.pallas import tpu as pltpu

INPUT_DIM = 784
HIDDEN_DIM = 400
LATENT_DIM = 20
NEG_SLOPE = 0.2

# Padded (kernel-internal) dims.
HIDDEN_PAD = 512          # 400 -> 512 (2x256 MXU / 4x128)
LATENT_PAD = 64           # 20  -> 64  (half-vreg boundary)
MULV_PAD = 2 * LATENT_PAD  # packed (mu | log_var) lanes = 128


def _round_up(n, m):
    return ((n + m - 1) // m) * m


def _leaky_relu(x):
    return jnp.where(x >= 0, x, NEG_SLOPE * x)


def vae_kernel(
    x_ref, eps_ref,
    w1_ref, b1_ref,
    wml_ref, bml_ref,
    w3_ref, b3_ref,
    w4_ref, b4_ref,
    recon_ref, mulv_ref,
):
    x = x_ref[...]                                                # (TB, 784) bf16

    # ---- encode: fc1 -> LeakyReLU (bf16 MXU operands, f32 accumulate) ----
    h = jnp.dot(x, w1_ref[...],
                preferred_element_type=jnp.float32) + b1_ref[...]
    h = _leaky_relu(h)                                            # (TB, 512) f32, pad cols == 0

    # ---- fused mu / log_var projection: single (512, 128) matmul ----
    mulv = jnp.dot(h.astype(jnp.bfloat16), wml_ref[...],
                   preferred_element_type=jnp.float32) + bml_ref[...]  # (TB, 128)
    mu = mulv[:, :LATENT_PAD]                                     # [mu(20) | zeros]
    log_var = mulv[:, LATENT_PAD:]                                # [log_var(20) | zeros]

    # ---- reparameterize (eps zero-padded to 64 lanes -> pad lanes of z stay 0) ----
    std = jnp.exp(0.5 * log_var)
    z = mu + eps_ref[...] * std                                   # (TB, 64) f32

    # ---- decode: fc3 -> LeakyReLU -> fc4 -> sigmoid ----
    h2 = jnp.dot(z.astype(jnp.bfloat16), w3_ref[...],
                 preferred_element_type=jnp.float32) + b3_ref[...]
    h2 = _leaky_relu(h2)                                          # (TB, 512) f32

    logits = jnp.dot(h2.astype(jnp.bfloat16), w4_ref[...],
                     preferred_element_type=jnp.float32) + b4_ref[...]  # (TB, 784)
    # sigmoid(x) = 0.5 * tanh(0.5 x) + 0.5 : single EUP op + VPU fma
    recon = 0.5 * jnp.tanh(0.5 * logits) + 0.5

    recon_ref[...] = recon
    mulv_ref[...] = mulv                                          # packed (mu | log_var), lane-dense


def _choose_block_b(B, block_b):
    """Pick the batch tile: multiple of 16, prefer dividing B, aim for >=2 steps."""
    if B <= 16:
        return B                                  # single full-extent block
    # >=2 grid steps so v7x can shard the parallel axis across both TCs.
    cap = max(16, min(block_b, _round_up(-(-B // 2), 16)))
    cap = (cap // 16) * 16
    t = cap
    while t >= 16:                                # largest tile dividing B (no jnp.pad copy)
        if B % t == 0:
            return t
        t -= 16
    return cap                                    # fallback: pad the batch


def vae_forward(x, eps, params, *, block_b=512):
    """x: (B, 28, 28), eps: (B, LATENT_DIM).  Returns (recon_x, mu, log_var)."""
    B = x.shape[0]
    x_flat = x.reshape(B, INPUT_DIM).astype(jnp.bfloat16)
    eps_p = jnp.pad(eps.astype(jnp.float32),
                    ((0, 0), (0, LATENT_PAD - LATENT_DIM)))       # (B, 64)

    TB = _choose_block_b(B, block_b)
    n_blocks = -(-B // TB)
    Bp = n_blocks * TB
    if Bp != B:                                   # only when no divisor tile exists
        pad = Bp - B
        x_flat = jnp.pad(x_flat, ((0, pad), (0, 0)))
        eps_p = jnp.pad(eps_p, ((0, pad), (0, 0)))

    def row_spec(shape):       # batch-tiled operand
        return pl.BlockSpec(shape, lambda i: (i, 0))

    def resident(shape):       # weights/biases: same block every step -> VMEM-resident
        return pl.BlockSpec(shape, lambda i: (0, 0))

    args = (
        x_flat, eps_p,
        params["w1"], params["b1"],
        params["wml"], params["bml"],
        params["w3"], params["b3"],
        params["w4"], params["b4"],
    )

    in_specs = [
        row_spec((TB, INPUT_DIM)),
        row_spec((TB, LATENT_PAD)),
        resident((INPUT_DIM, HIDDEN_PAD)),
        resident((1, HIDDEN_PAD)),
        resident((HIDDEN_PAD, MULV_PAD)),
        resident((1, MULV_PAD)),
        resident((LATENT_PAD, HIDDEN_PAD)),
        resident((1, HIDDEN_PAD)),
        resident((HIDDEN_PAD, INPUT_DIM)),
        resident((1, INPUT_DIM)),
    ]

    recon_flat, mulv = pl.pallas_call(
        vae_kernel,
        grid=(n_blocks,),
        in_specs=in_specs,
        out_specs=(
            row_spec((TB, INPUT_DIM)),
            row_spec((TB, MULV_PAD)),
        ),
        out_shape=(
            jax.ShapeDtypeStruct((Bp, INPUT_DIM), jnp.float32),
            jax.ShapeDtypeStruct((Bp, MULV_PAD), jnp.float32),
        ),
        compiler_params=pltpu.CompilerParams(
            dimension_semantics=("parallel",),
            vmem_limit_bytes=48 * 1024 * 1024,
        ),
    )(*args)

    recon_x = recon_flat[:B].reshape(B, 28, 28)
    mu = mulv[:B, :LATENT_DIM]
    log_var = mulv[:B, LATENT_PAD:LATENT_PAD + LATENT_DIM]
    return recon_x, mu, log_var


def init_params(key):
    """PyTorch nn.Linear-style init (U[-1/sqrt(fan_in), +]), then zero-padded
    to MXU-friendly shapes, pre-transposed to (in, out), weights cast to bf16.

    Pad regions are exactly zero, so padded-lane activations stay exactly zero
    and results match the unpadded model."""
    def linear(key, fan_in, fan_out):
        kw, kb = jax.random.split(key)
        bound = 1.0 / jnp.sqrt(fan_in)
        w = jax.random.uniform(kw, (fan_in, fan_out), jnp.float32, -bound, bound)
        b = jax.random.uniform(kb, (1, fan_out), jnp.float32, -bound, bound)
        return w, b

    k1, k2, k3, k4, k5 = jax.random.split(key, 5)
    w1, b1 = linear(k1, INPUT_DIM, HIDDEN_DIM)        # (784, 400)
    wmu, bmu = linear(k2, HIDDEN_DIM, LATENT_DIM)     # (400, 20)
    wlv, blv = linear(k3, HIDDEN_DIM, LATENT_DIM)     # (400, 20)
    w3, b3 = linear(k4, LATENT_DIM, HIDDEN_DIM)       # (20, 400)
    w4, b4 = linear(k5, HIDDEN_DIM, INPUT_DIM)        # (400, 784)

    hp = HIDDEN_PAD - HIDDEN_DIM                      # 112
    lp = LATENT_PAD - LATENT_DIM                      # 44

    # fc1: pad output cols 400->512
    w1p = jnp.pad(w1, ((0, 0), (0, hp)))
    b1p = jnp.pad(b1, ((0, 0), (0, hp)))

    # fused mu|logvar: rows 400->512, packed lanes [mu | 0 | logvar | 0] = 128
    wml = jnp.concatenate(
        [jnp.pad(wmu, ((0, hp), (0, lp))), jnp.pad(wlv, ((0, hp), (0, lp)))], axis=1)
    bml = jnp.concatenate(
        [jnp.pad(bmu, ((0, 0), (0, lp))), jnp.pad(blv, ((0, 0), (0, lp)))], axis=1)

    # fc3: rows 20->64, cols 400->512
    w3p = jnp.pad(w3, ((0, lp), (0, hp)))
    b3p = jnp.pad(b3, ((0, 0), (0, hp)))

    # fc4: rows 400->512
    w4p = jnp.pad(w4, ((0, hp), (0, 0)))

    return dict(
        w1=w1p.astype(jnp.bfloat16), b1=b1p,
        wml=wml.astype(jnp.bfloat16), bml=bml,
        w3=w3p.astype(jnp.bfloat16), b3=b3p,
        w4=w4p.astype(jnp.bfloat16), b4=b4,
    )


def reference_forward(x, eps, params):
    """Pure-JAX f32 reference using the same (bf16-rounded, zero-padded) weights."""
    B = x.shape[0]
    xf = x.reshape(B, INPUT_DIM).astype(jnp.bfloat16).astype(jnp.float32)
    w1 = params["w1"].astype(jnp.float32)
    wml = params["wml"].astype(jnp.float32)
    w3 = params["w3"].astype(jnp.float32)
    w4 = params["w4"].astype(jnp.float32)
    eps_p = jnp.pad(eps.astype(jnp.float32), ((0, 0), (0, LATENT_PAD - LATENT_DIM)))

    h = xf @ w1 + params["b1"]
    h = jnp.where(h >= 0, h, NEG_SLOPE * h)
    mulv = h @ wml + params["bml"]
    mu_p = mulv[:, :LATENT_PAD]
    lv_p = mulv[:, LATENT_PAD:]
    z = mu_p + eps_p * jnp.exp(0.5 * lv_p)
    h2 = z @ w3 + params["b3"]
    h2 = jnp.where(h2 >= 0, h2, NEG_SLOPE * h2)
    recon = jax.nn.sigmoid(h2 @ w4 + params["b4"])
    mu = mulv[:, :LATENT_DIM]
    lv = mulv[:, LATENT_PAD:LATENT_PAD + LATENT_DIM]
    return recon.reshape(B, 28, 28), mu, lv


if __name__ == "__main__":
    key = jax.random.PRNGKey(0)
    k_params, k_x, k_eps = jax.random.split(key, 3)

    B = 32                      # -> TB=16, 2 grid steps (exercises pipelining / megacore split)
    params = init_params(k_params)
    x = jax.random.uniform(k_x, (B, 28, 28), jnp.float32)         # MNIST-like input in [0,1]
    eps = jax.random.normal(k_eps, (B, LATENT_DIM), jnp.float32)  # reparam noise
    labels = None               # labels are unused by the model

    recon_x, mu, log_var = vae_forward(x, eps, params)
    jax.block_until_ready((recon_x, mu, log_var))

    # sanity-check against pure-JAX reference (bf16 MXU operands -> relaxed tols)
    r_ref, mu_ref, lv_ref = reference_forward(x, eps, params)
    assert recon_x.shape == (B, 28, 28)
    assert mu.shape == (B, LATENT_DIM) and log_var.shape == (B, LATENT_DIM)
    assert bool(jnp.all((recon_x > 0.0) & (recon_x < 1.0)))
    assert jnp.allclose(recon_x, r_ref, atol=3e-2, rtol=3e-2)
    assert jnp.allclose(mu, mu_ref, atol=3e-2, rtol=3e-2)
    assert jnp.allclose(log_var, lv_ref, atol=3e-2, rtol=3e-2)

    print("KERNEL_OK")
</pallas_src>

<mosaic_0001>
module attributes {stable_mosaic.version = 11 : i64} {
  func.func @vae_kernel(%arg0: i32, %arg1: memref<16x784xbf16, #tpu.memory_space<vmem>>, %arg2: memref<16x64xf32, #tpu.memory_space<vmem>>, %arg3: memref<784x512xbf16, #tpu.memory_space<vmem>>, %arg4: memref<1x512xf32, #tpu.memory_space<vmem>>, %arg5: memref<512x128xbf16, #tpu.memory_space<vmem>>, %arg6: memref<1x128xf32, #tpu.memory_space<vmem>>, %arg7: memref<64x512xbf16, #tpu.memory_space<vmem>>, %arg8: memref<1x512xf32, #tpu.memory_space<vmem>>, %arg9: memref<512x784xbf16, #tpu.memory_space<vmem>>, %arg10: memref<1x784xf32, #tpu.memory_space<vmem>>, %arg11: memref<16x784xf32, #tpu.memory_space<vmem>>, %arg12: memref<16x128xf32, #tpu.memory_space<vmem>>) attributes {dimension_semantics = [#tpu.dimension_semantics<parallel>], iteration_bounds = array<i64: 2>, scalar_prefetch = 0 : i64, scratch_operands = 0 : i64, tpu.core_type = #tpu.core_type<tc>, window_params = [{transform_indices = @transform_0, window_bounds = array<i64: 16, 784>}, {transform_indices = @transform_1, window_bounds = array<i64: 16, 64>}, {pipeline_mode = #tpu.pipeline_mode<synchronous>, transform_indices = @transform_2, window_bounds = array<i64: 784, 512>}, {pipeline_mode = #tpu.pipeline_mode<synchronous>, transform_indices = @transform_3, window_bounds = array<i64: 1, 512>}, {pipeline_mode = #tpu.pipeline_mode<synchronous>, transform_indices = @transform_4, window_bounds = array<i64: 512, 128>}, {pipeline_mode = #tpu.pipeline_mode<synchronous>, transform_indices = @transform_5, window_bounds = array<i64: 1, 128>}, {pipeline_mode = #tpu.pipeline_mode<synchronous>, transform_indices = @transform_6, window_bounds = array<i64: 64, 512>}, {pipeline_mode = #tpu.pipeline_mode<synchronous>, transform_indices = @transform_7, window_bounds = array<i64: 1, 512>}, {pipeline_mode = #tpu.pipeline_mode<synchronous>, transform_indices = @transform_8, window_bounds = array<i64: 512, 784>}, {pipeline_mode = #tpu.pipeline_mode<synchronous>, transform_indices = @transform_9, window_bounds = array<i64: 1, 784>}, {transform_indices = @transform_10, window_bounds = array<i64: 16, 784>}, {transform_indices = @transform_11, window_bounds = array<i64: 16, 128>}]} {
    %c0 = arith.constant 0 : index
    %c0_0 = arith.constant 0 : index
    %0 = vector.load %arg1[%c0, %c0_0] : memref<16x784xbf16, #tpu.memory_space<vmem>>, vector<16x784xbf16>
    %c0_1 = arith.constant 0 : index
    %c0_2 = arith.constant 0 : index
    %1 = vector.load %arg3[%c0_1, %c0_2] : memref<784x512xbf16, #tpu.memory_space<vmem>>, vector<784x512xbf16>
    %cst = arith.constant dense<0.000000e+00> : vector<16x512xf32>
    %2 = tpu.matmul %0, %1, %cst {dimension_numbers = #tpu.dot_dimension_numbers<[1], [0], [0], [1], [0, 0, 1, 1], [], []>} : vector<16x784xbf16>, vector<784x512xbf16>, vector<16x512xf32> -> vector<16x512xf32>
    %c0_3 = arith.constant 0 : index
    %c0_4 = arith.constant 0 : index
    %3 = vector.load %arg4[%c0_3, %c0_4] : memref<1x512xf32, #tpu.memory_space<vmem>>, vector<1x512xf32>
    %4 = vector.broadcast %3 : vector<1x512xf32> to vector<16x512xf32>
    %5 = arith.addf %2, %4 : vector<16x512xf32>
    %cst_5 = arith.constant 0.000000e+00 : f32
    %6 = vector.broadcast %cst_5 : f32 to vector<16x512xf32>
    %7 = arith.cmpf oge, %5, %6 : vector<16x512xf32>
    %cst_6 = arith.constant 2.000000e-01 : f32
    %8 = vector.broadcast %cst_6 : f32 to vector<16x512xf32>
    %9 = arith.mulf %8, %5 : vector<16x512xf32>
    %10 = arith.select %7, %5, %9 : vector<16x512xi1>, vector<16x512xf32>
    %11 = arith.truncf %10 : vector<16x512xf32> to vector<16x512xbf16>
    %c0_7 = arith.constant 0 : index
    %c0_8 = arith.constant 0 : index
    %12 = vector.load %arg5[%c0_7, %c0_8] : memref<512x128xbf16, #tpu.memory_space<vmem>>, vector<512x128xbf16>
    %cst_9 = arith.constant dense<0.000000e+00> : vector<16x128xf32>
    %13 = tpu.matmul %11, %12, %cst_9 {dimension_numbers = #tpu.dot_dimension_numbers<[1], [0], [0], [1], [0, 0, 1, 1], [], []>} : vector<16x512xbf16>, vector<512x128xbf16>, vector<16x128xf32> -> vector<16x128xf32>
    %c0_10 = arith.constant 0 : index
    %c0_11 = arith.constant 0 : index
    %14 = vector.load %arg6[%c0_10, %c0_11] : memref<1x128xf32, #tpu.memory_space<vmem>>, vector<1x128xf32>
    %15 = vector.broadcast %14 : vector<1x128xf32> to vector<16x128xf32>
    %16 = arith.addf %13, %15 : vector<16x128xf32>
    %17 = vector.extract_strided_slice %16 {offsets = [0, 0], sizes = [16, 64], strides = [1, 1]} : vector<16x128xf32> to vector<16x64xf32>
    %18 = vector.extract_strided_slice %16 {offsets = [0, 64], sizes = [16, 64], strides = [1, 1]} : vector<16x128xf32> to vector<16x64xf32>
    %cst_12 = arith.constant 5.000000e-01 : f32
    %19 = vector.broadcast %cst_12 : f32 to vector<16x64xf32>
    %20 = arith.mulf %19, %18 : vector<16x64xf32>
    %21 = math.exp %20 : vector<16x64xf32>
    %c0_13 = arith.constant 0 : index
    %c0_14 = arith.constant 0 : index
    %22 = vector.load %arg2[%c0_13, %c0_14] : memref<16x64xf32, #tpu.memory_space<vmem>>, vector<16x64xf32>
    %23 = arith.mulf %22, %21 : vector<16x64xf32>
    %24 = arith.addf %17, %23 : vector<16x64xf32>
    %25 = arith.truncf %24 : vector<16x64xf32> to vector<16x64xbf16>
    %c0_15 = arith.constant 0 : index
    %c0_16 = arith.constant 0 : index
    %26 = vector.load %arg7[%c0_15, %c0_16] : memref<64x512xbf16, #tpu.memory_space<vmem>>, vector<64x512xbf16>
    %cst_17 = arith.constant dense<0.000000e+00> : vector<16x512xf32>
    %27 = tpu.matmul %25, %26, %cst_17 {dimension_numbers = #tpu.dot_dimension_numbers<[1], [0], [0], [1], [0, 0, 1, 1], [], []>} : vector<16x64xbf16>, vector<64x512xbf16>, vector<16x512xf32> -> vector<16x512xf32>
    %c0_18 = arith.constant 0 : index
    %c0_19 = arith.constant 0 : index
    %28 = vector.load %arg8[%c0_18, %c0_19] : memref<1x512xf32, #tpu.memory_space<vmem>>, vector<1x512xf32>
    %29 = vector.broadcast %28 : vector<1x512xf32> to vector<16x512xf32>
    %30 = arith.addf %27, %29 : vector<16x512xf32>
    %cst_20 = arith.constant 0.000000e+00 : f32
    %31 = vector.broadcast %cst_20 : f32 to vector<16x512xf32>
    %32 = arith.cmpf oge, %30, %31 : vector<16x512xf32>
    %cst_21 = arith.constant 2.000000e-01 : f32
    %33 = vector.broadcast %cst_21 : f32 to vector<16x512xf32>
    %34 = arith.mulf %33, %30 : vector<16x512xf32>
    %35 = arith.select %32, %30, %34 : vector<16x512xi1>, vector<16x512xf32>
    %36 = arith.truncf %35 : vector<16x512xf32> to vector<16x512xbf16>
    %c0_22 = arith.constant 0 : index
    %c0_23 = arith.constant 0 : index
    %37 = vector.load %arg9[%c0_22, %c0_23] : memref<512x784xbf16, #tpu.memory_space<vmem>>, vector<512x784xbf16>
    %cst_24 = arith.constant dense<0.000000e+00> : vector<16x784xf32>
    %38 = tpu.matmul %36, %37, %cst_24 {dimension_numbers = #tpu.dot_dimension_numbers<[1], [0], [0], [1], [0, 0, 1, 1], [], []>} : vector<16x512xbf16>, vector<512x784xbf16>, vector<16x784xf32> -> vector<16x784xf32>
    %c0_25 = arith.constant 0 : index
    %c0_26 = arith.constant 0 : index
    %39 = vector.load %arg10[%c0_25, %c0_26] : memref<1x784xf32, #tpu.memory_space<vmem>>, vector<1x784xf32>
    %40 = vector.broadcast %39 : vector<1x784xf32> to vector<16x784xf32>
    %41 = arith.addf %38, %40 : vector<16x784xf32>
    %cst_27 = arith.constant 5.000000e-01 : f32
    %42 = vector.broadcast %cst_27 : f32 to vector<16x784xf32>
    %43 = arith.mulf %42, %41 : vector<16x784xf32>
    %44 = math.tanh %43 : vector<16x784xf32>
    %cst_28 = arith.constant 5.000000e-01 : f32
    %45 = vector.broadcast %cst_28 : f32 to vector<16x784xf32>
    %46 = arith.mulf %45, %44 : vector<16x784xf32>
    %cst_29 = arith.constant 5.000000e-01 : f32
    %47 = vector.broadcast %cst_29 : f32 to vector<16x784xf32>
    %48 = arith.addf %46, %47 : vector<16x784xf32>
    %c0_30 = arith.constant 0 : index
    %c0_31 = arith.constant 0 : index
    %49 = vector.load %arg11[%c0_30, %c0_31] : memref<16x784xf32, #tpu.memory_space<vmem>>, vector<16x784xf32>
    tpu.vector_store %arg11[%c0_30, %c0_31], %48 {strides = array<i32>} : memref<16x784xf32, #tpu.memory_space<vmem>>, vector<16x784xf32>,
    %c0_32 = arith.constant 0 : index
    %c0_33 = arith.constant 0 : index
    %50 = vector.load %arg12[%c0_32, %c0_33] : memref<16x128xf32, #tpu.memory_space<vmem>>, vector<16x128xf32>
    tpu.vector_store %arg12[%c0_32, %c0_33], %16 {strides = array<i32>} : memref<16x128xf32, #tpu.memory_space<vmem>>, vector<16x128xf32>,
    return
  }
  func.func @transform_0(%arg0: i32) -> (i32, i32) {
    %c0_i32 = arith.constant 0 : i32
    %c0_i32_0 = arith.constant 0 : i32
    return %arg0, %c0_i32 : i32, i32
  }
  func.func @transform_1(%arg0: i32) -> (i32, i32) {
    %c0_i32 = arith.constant 0 : i32
    %c0_i32_0 = arith.constant 0 : i32
    return %arg0, %c0_i32 : i32, i32
  }
  func.func @transform_2(%arg0: i32) -> (i32, i32) {
    %c0_i32 = arith.constant 0 : i32
    %c0_i32_0 = arith.constant 0 : i32
    %c0_i32_1 = arith.constant 0 : i32
    return %c0_i32, %c0_i32_0 : i32, i32
  }
  func.func @transform_3(%arg0: i32) -> (i32, i32) {
    %c0_i32 = arith.constant 0 : i32
    %c0_i32_0 = arith.constant 0 : i32
    %c0_i32_1 = arith.constant 0 : i32
    return %c0_i32, %c0_i32_0 : i32, i32
  }
  func.func @transform_4(%arg0: i32) -> (i32, i32) {
    %c0_i32 = arith.constant 0 : i32
    %c0_i32_0 = arith.constant 0 : i32
    %c0_i32_1 = arith.constant 0 : i32
    return %c0_i32, %c0_i32_0 : i32, i32
  }
  func.func @transform_5(%arg0: i32) -> (i32, i32) {
    %c0_i32 = arith.constant 0 : i32
    %c0_i32_0 = arith.constant 0 : i32
    %c0_i32_1 = arith.constant 0 : i32
    return %c0_i32, %c0_i32_0 : i32, i32
  }
  func.func @transform_6(%arg0: i32) -> (i32, i32) {
    %c0_i32 = arith.constant 0 : i32
    %c0_i32_0 = arith.constant 0 : i32
    %c0_i32_1 = arith.constant 0 : i32
    return %c0_i32, %c0_i32_0 : i32, i32
  }
  func.func @transform_7(%arg0: i32) -> (i32, i32) {
    %c0_i32 = arith.constant 0 : i32
    %c0_i32_0 = arith.constant 0 : i32
    %c0_i32_1 = arith.constant 0 : i32
    return %c0_i32, %c0_i32_0 : i32, i32
  }
  func.func @transform_8(%arg0: i32) -> (i32, i32) {
    %c0_i32 = arith.constant 0 : i32
    %c0_i32_0 = arith.constant 0 : i32
    %c0_i32_1 = arith.constant 0 : i32
    return %c0_i32, %c0_i32_0 : i32, i32
  }
  func.func @transform_9(%arg0: i32) -> (i32, i32) {
    %c0_i32 = arith.constant 0 : i32
    %c0_i32_0 = arith.constant 0 : i32
    %c0_i32_1 = arith.constant 0 : i32
    return %c0_i32, %c0_i32_0 : i32, i32
  }
  func.func @transform_10(%arg0: i32) -> (i32, i32) {
    %c0_i32 = arith.constant 0 : i32
    %c0_i32_0 = arith.constant 0 : i32
    return %arg0, %c0_i32 : i32, i32
  }
  func.func @transform_11(%arg0: i32) -> (i32, i32) {
    %c0_i32 = arith.constant 0 : i32
    %c0_i32_0 = arith.constant 0 : i32
    return %arg0, %c0_i32 : i32, i32
  }
}

</mosaic_0001>

<bundles_post_ra>
// kernel: tpu_custom_call.1
= control target key start
LH: loop header
LB: loop body
LE: loop exit
PB: predicated region body
PF: predicated region fallthrough
CT: control target
= control target key end

     0   :  { %17 = vsyncpa [#allocation3], 0  ;;  %s7881_s0 = inlined_call_operand.vmem [shape: bf16[32,784], index: 0, kind: input, shape index: {}]   ;;  %s7882_s1 = inlined_call_operand.vmem [shape: f32[32,64], index: 1, kind: input, shape index: {}]   ;;  %s7883_s2 = inlined_call_operand.vmem [shape: bf16[784,512], index: 2, kind: input, shape index: {}]   ;;  %s7884_s3 = inlined_call_operand.vmem [shape: f32[1,512], index: 3, kind: input, shape index: {}]   ;;  %s7885_s4 = inlined_call_operand.vmem [shape: bf16[512,128], index: 4, kind: input, shape index: {}]   ;;  %s7886_s5 = inlined_call_operand.vmem [shape: f32[1,128], index: 5, kind: input, shape index: {}]   ;;  %s7887_s6 = inlined_call_operand.vmem [shape: bf16[64,512], index: 6, kind: input, shape index: {}]   ;;  %s7888_s7 = inlined_call_operand.vmem [shape: f32[1,512], index: 7, kind: input, shape index: {}]   ;;  %s7889_s8 = inlined_call_operand.vmem [shape: bf16[512,784], index: 8, kind: input, shape index: {}]   ;;  %s7890_s9 = inlined_call_operand.vmem [shape: f32[1,784], index: 9, kind: input, shape index: {}]   ;;  %s7891_s10 = inlined_call_operand.hbm [shape: f32[32,784], index: 10, kind: output, shape index: {0}]   ;;  %s7892_s11 = inlined_call_operand.hbm [shape: f32[32,128], index: 11, kind: output, shape index: {1}]  }
   0x1   :  { %19 = vsyncpa [#allocation3 + $0x1], 0 }
   0x2   :  { %20 = vsyncpa [#allocation5], 0 }
   0x3   :  { %22 = vsyncpa [#allocation5 + $0x1], 0  ;;  %s6215_s17 = smov 0   ;;  %s6217_s18 = smov 0  }
   0x4   :  { %s6219_s19 = smov 0   ;;  %s6221_s20 = smov 0  }
   0x5 LB: > { %7896 = sst [smem:[#allocation8_spill]] %s6141_s19  ;;  %s6236_s21 = sadd.s32 4294967295, %s6145_s20   ;;  %s6145_s20 = sphi %s6221_s20, %s7901_s20   ;;  %s6141_s19 = sphi %s6219_s19, %s7903_s19   ;;  %s6137_s18 = sphi %s6217_s18, %s7905_s18   ;;  %s6133_s17 = sphi %s6215_s17, %s7904_s17  }
   0x6   : > { %s4644_s22 = sadd.s32 4294967294, %s6145_s20   ;;  %s6240_s23 = sadd.s32 1, %s6145_s20  }
   0x7   : > { %7897 = sst [smem:[#allocation9_spill]] %s6240_s23  ;;  %s255_s24 = sadd.s32 1, %s6141_s19 }
   0x8   : > { %s252_s25 = ssub.s32 %s6145_s20, %s6240_s23  ;;  %p265_p0 = scmp.ne.s32.totalorder %s6141_s19, %s6137_s18 }
   0x9   : > { %p253_p1 = scmp.eq.s32.totalorder %s252_s25, 0  ;;  %p266_p2 = scmp.eq.s32.totalorder %s6236_s21, 1 }
   0xa   : > { %p271_p3 = scmp.ne.s32.totalorder %s6137_s18, %s6133_s17  ;;  %p272_p4 = scmp.eq.s32.totalorder %s4644_s22, 1 }
   0xb   : > { %s6251_s26 = scalar_select %p253_p1, %s6141_s19, %s255_s24  }
   0xc   : > { %p6253_p5 = por %p266_p2, %p265_p0  ;;  %p6257_p6 = por %p272_p4, %p271_p3 }
   0xd   : > { %7898 = sst [smem:[#allocation10_spill]] %s6251_s26  ;;  %p4647_p7 = scmp.ge.s32.totalorder %s6145_s20, 1 }
   0xe   : > { %p359_p8 = scmp.lt.s32.totalorder %s6145_s20, 3 }
  0x10   : > { %p360_p9 = pnand %p4647_p7, %p359_p8 }
  0x11   : > { %v5339_v0 = vld [vmem:[%s7883_s2 + $0x4] ss:$16 sps:$4 sm:$0xff] (!%p360_p9)   ;;  %v5341_v1 = vld [vmem:[%s7883_s2 + $0xc] ss:$16 sps:$4 sm:$0xff] (!%p360_p9)   ;;  %v5343_v2 = vld [vmem:[%s7883_s2] ss:$16 sps:$4 sm:$0xff] (!%p360_p9)  }
  0x12   : > { %363 = sbr.rel (%p360_p9) target bundleno = 1502 (0x5de), region = 60  ;;  %1671 = vmatprep.subr.bf16.mxu0 (!%p360_p9), %v5339_v0  ;;  %v5344_v3 = vld [vmem:[%s7883_s2 + $0x8] ss:$16 sps:$4 sm:$0xff] (!%p360_p9)   ;;  %1843 = vmatprep.subr.bf16.mxu1 (!%p360_p9), %v5341_v1  ;;  %v5345_v4 = vld [vmem:[%s7883_s2 + $0x24] ss:$16 sps:$4 sm:$0xff] (!%p360_p9)   ;;  %s4649_s29 = sshll.u32 (!%p360_p9), %s6236_s21, 1 }
  0x13   : > { %1672 = vmatpush1.bf16.msra.mxu0 (!%p360_p9), %v5343_v2  ;;  %1844 = vmatpush1.bf16.msra.mxu1 (!%p360_p9), %v5344_v3  ;;  %v5347_v5 = vld [vmem:[%s7883_s2 + $0x2c] ss:$16 sps:$4 sm:$0xff] (!%p360_p9)   ;;  %v5349_v6 = vld [vmem:[%s7883_s2 + $0x20] ss:$16 sps:$4 sm:$0xff] (!%p360_p9)   ;;  %v5350_v7 = vld [vmem:[%s7883_s2 + $0x28] ss:$16 sps:$4 sm:$0xff] (!%p360_p9)  }
  0x14   : > { %1673 = vmatprep.subr.bf16.mxu0 (!%p360_p9), %v5345_v4  ;;  %1845 = vmatprep.subr.bf16.mxu1 (!%p360_p9), %v5347_v5  ;;  %v5351_v8 = vld [vmem:[%s7883_s2 + $0x44] ss:$16 sps:$4 sm:$0xff] (!%p360_p9)   ;;  %v5353_v9 = vld [vmem:[%s7883_s2 + $0x4c] ss:$16 sps:$4 sm:$0xff] (!%p360_p9)   ;;  %v5355_v10 = vld [vmem:[%s7883_s2 + $0x40] ss:$16 sps:$4 sm:$0xff] (!%p360_p9)  }
  0x15   : > { %v5356_v11 = vld [vmem:[%s7883_s2 + $0x48] ss:$16 sps:$4 sm:$0xff] (!%p360_p9)   ;;  %v5357_v12 = vld [vmem:[%s7883_s2 + $0x64] ss:$16 sps:$4 sm:$0xff] (!%p360_p9)   ;;  %v5359_v13 = vld [vmem:[%s7883_s2 + $0x6c] ss:$16 sps:$4 sm:$0xff] (!%p360_p9)  }
  0x16   : > { %v5361_v14 = vld [vmem:[%s7883_s2 + $0x60] ss:$16 sps:$4 sm:$0xff] (!%p360_p9)   ;;  %v5362_v15 = vld [vmem:[%s7883_s2 + $0x68] ss:$16 sps:$4 sm:$0xff] (!%p360_p9)   ;;  %v5363_v16 = vld [vmem:[%s7883_s2 + $0x84] ss:$16 sps:$4 sm:$0xff] (!%p360_p9)  }
  0x17   : > { %1674 = vmatpush1.bf16.msra.mxu0 (!%p360_p9), %v5349_v6  ;;  %1846 = vmatpush1.bf16.msra.mxu1 (!%p360_p9), %v5350_v7  ;;  %v5365_v17 = vld [vmem:[%s7883_s2 + $0x8c] ss:$16 sps:$4 sm:$0xff] (!%p360_p9)   ;;  %v5367_v18 = vld [vmem:[%s7883_s2 + $0x80] ss:$16 sps:$4 sm:$0xff] (!%p360_p9)   ;;  %v5368_v19 = vld [vmem:[%s7883_s2 + $0x88] ss:$16 sps:$4 sm:$0xff] (!%p360_p9)  }
  0x18   : > { %1675 = vmatprep.subr.bf16.mxu0 (!%p360_p9), %v5351_v8  ;;  %1847 = vmatprep.subr.bf16.mxu1 (!%p360_p9), %v5353_v9  ;;  %v5369_v20 = vld [vmem:[%s7883_s2 + $0xa4] ss:$16 sps:$4 sm:$0xff] (!%p360_p9)   ;;  %v5371_v21 = vld [vmem:[%s7883_s2 + $0xac] ss:$16 sps:$4 sm:$0xff] (!%p360_p9)   ;;  %v5373_v22 = vld [vmem:[%s7883_s2 + $0xa0] ss:$16 sps:$4 sm:$0xff] (!%p360_p9)  }
  0x19   : > { %v5374_v23 = vld [vmem:[%s7883_s2 + $0xa8] ss:$16 sps:$4 sm:$0xff]   ;;  %v5375_v24 = vld [vmem:[%s7883_s2 + $0xc4] ss:$16 sps:$4 sm:$0xff]   ;;  %v5377_v25 = vld [vmem:[%s7883_s2 + $0xcc] ss:$16 sps:$4 sm:$0xff]  }
  0x1a   : > { %v5379_v26 = vld [vmem:[%s7883_s2 + $0xc0] ss:$16 sps:$4 sm:$0xff]   ;;  %v5380_v27 = vld [vmem:[%s7883_s2 + $0xc8] ss:$16 sps:$4 sm:$0xff]   ;;  %v5381_v28 = vld [vmem:[%s7883_s2 + $0xe4] ss:$16 sps:$4 sm:$0xff]  }
  0x1b   : > { %1676 = vmatpush1.bf16.msra.mxu0 %v5355_v10  ;;  %1848 = vmatpush1.bf16.msra.mxu1 %v5356_v11  ;;  %v5383_v29 = vld [vmem:[%s7883_s2 + $0xec] ss:$16 sps:$4 sm:$0xff]   ;;  %v5385_v30 = vld [vmem:[%s7883_s2 + $0xe0] ss:$16 sps:$4 sm:$0xff]   ;;  %v5386_v31 = vld [vmem:[%s7883_s2 + $0xe8] ss:$16 sps:$4 sm:$0xff]  }
  0x1c   : > { %1677 = vmatprep.subr.bf16.mxu0 %v5357_v12  ;;  %1849 = vmatprep.subr.bf16.mxu1 %v5359_v13  ;;  %v5387_v32 = vld [vmem:[%s7883_s2 + $0x104] ss:$16 sps:$4 sm:$0xff]   ;;  %p411_p10 = scmp.lt.s32.totalorder %s4649_s29, 3  ;;  %v5389_v33 = vld [vmem:[%s7883_s2 + $0x10c] ss:$16 sps:$4 sm:$0xff]   ;;  %vm1667_vm0 = vcmask 130048  }
  0x1d   : > { %v5391_v34 = vld [vmem:[%s7883_s2 + $0x100] ss:$16 sps:$4 sm:$0xff]   ;;  %v5392_v35 = vld [vmem:[%s7883_s2 + $0x108] ss:$16 sps:$4 sm:$0xff]   ;;  %v5393_v36 = vld [vmem:[%s7883_s2 + $0x124] ss:$16 sps:$4 sm:$0xff]  }
  0x1e   : > { %s7907_s29 = smov (!%p411_p10, %s4649_s29), 3  ;;  %v5395_v37 = vld [vmem:[%s7883_s2 + $0x12c] ss:$16 sps:$4 sm:$0xff]   ;;  %v5397_v38 = vld [vmem:[%s7883_s2 + $0x120] ss:$16 sps:$4 sm:$0xff]   ;;  %s6148_s25 = smov 64  }
  0x1f   : > { %1678 = vmatpush1.bf16.msra.mxu0 %v5361_v14  ;;  %1850 = vmatpush1.bf16.msra.mxu1 %v5362_v15  ;;  %v5398_v39 = vld [vmem:[%s7883_s2 + $0x128] ss:$16 sps:$4 sm:$0xff]   ;;  %v5399_v40 = vld [vmem:[%s7883_s2 + $0x144] ss:$16 sps:$4 sm:$0xff]   ;;  %s5287_s13 = smul.u32 28, %s7907_s29  ;;  %s4652_s30 = sshll.u32 %s7907_s29, 3 }
  0x20   : > { %1679 = vmatprep.subr.bf16.mxu0 %v5363_v16  ;;  %1851 = vmatprep.subr.bf16.mxu1 %v5365_v17  ;;  %v5401_v41 = vld [vmem:[%s7883_s2 + $0x14c] ss:$16 sps:$4 sm:$0xff]   ;;  %v5403_v42 = vld [vmem:[%s7883_s2 + $0x140] ss:$16 sps:$4 sm:$0xff]   ;;  %v5404_v43 = vld [vmem:[%s7883_s2 + $0x148] ss:$16 sps:$4 sm:$0xff]   ;;  %s421_s15 = scalar_lea.vmem %s7882_s1, %s4652_s30 }
  0x21   : > { %v5405_v44 = vld [vmem:[%s7883_s2 + $0x164] ss:$16 sps:$4 sm:$0xff]   ;;  %s6405_s23 = scalar_lea.vmem %s7881_s0, %s5287_s13  ;;  %v5407_v45 = vld [vmem:[%s7883_s2 + $0x16c] ss:$16 sps:$4 sm:$0xff]   ;;  %v5409_v46 = vld [vmem:[%s7883_s2 + $0x160] ss:$16 sps:$4 sm:$0xff]  }
  0x22   : > { %v5410_v47 = vld [vmem:[%s7883_s2 + $0x168] ss:$16 sps:$4 sm:$0xff]   ;;  %v5437_v48 = vld [vmem:[%s6405_s23 + $0x4] ss:$28 sps:$4 sm:$0xff]   ;;  %v5413_v50 = vld [vmem:[%s7883_s2 + $0x18c] ss:$16 sps:$4 sm:$0xff]  }
  0x23   : > { %1680 = vmatpush1.bf16.msra.mxu0 %v5367_v18  ;;  %1852 = vmatpush1.bf16.msra.mxu1 %v5368_v19  ;;  %v5411_v49 = vld [vmem:[%s7883_s2 + $0x184] ss:$16 sps:$4 sm:$0xff]   ;;  %v5415_v51 = vld [vmem:[%s7883_s2 + $0x180] ss:$16 sps:$4 sm:$0xff]   ;;  %v5416_v52 = vld [vmem:[%s7883_s2 + $0x188] ss:$16 sps:$4 sm:$0xff]  }
  0x24   : > { %1681 = vmatprep.subr.bf16.mxu0 %v5369_v20  ;;  %1853 = vmatprep.subr.bf16.mxu1 %v5371_v21  ;;  %v5417_v53 = vld [vmem:[%s7883_s2 + $0x1a4] ss:$16 sps:$4 sm:$0xff]   ;;  %v5419_v54 = vld [vmem:[%s7883_s2 + $0x1ac] ss:$16 sps:$4 sm:$0xff]   ;;  %v5421_v55 = vld [vmem:[%s7883_s2 + $0x1a0] ss:$16 sps:$4 sm:$0xff]  }
  0x25   : > { %1703 = vmatprep.mubr.bf16.mxu0 %v5437_v48  ;;  %1875 = vmatprep.mubr.bf16.mxu1 %v5437_v48  ;;  %v5422_v56 = vld [vmem:[%s7883_s2 + $0x1a8] ss:$16 sps:$4 sm:$0xff]   ;;  %v5423_v57 = vld [vmem:[%s7883_s2 + $0x1c4] ss:$16 sps:$4 sm:$0xff]   ;;  %v5425_v58 = vld [vmem:[%s7883_s2 + $0x1cc] ss:$16 sps:$4 sm:$0xff]  }
  0x26   : > { %v5427_v59 = vld [vmem:[%s7883_s2 + $0x1c0] ss:$16 sps:$4 sm:$0xff]   ;;  %v5428_v60 = vld [vmem:[%s7883_s2 + $0x1c8] ss:$16 sps:$4 sm:$0xff]   ;;  %v5429_v61 = vld [vmem:[%s7883_s2 + $0x1e4] ss:$16 sps:$4 sm:$0xff]  }
  0x27   : > { %1682 = vmatpush1.bf16.msra.mxu0 %v5373_v22  ;;  %1854 = vmatpush1.bf16.msra.mxu1 %v5374_v23  ;;  %v5431_v62 = vld [vmem:[%s7883_s2 + $0x1ec] ss:$16 sps:$4 sm:$0xff]   ;;  %v5433_v63 = vld [vmem:[%s7883_s2 + $0x1e0] ss:$16 sps:$4 sm:$0xff]   ;;  %v5434_v0 = vld [vmem:[%s7883_s2 + $0x1e8] ss:$16 sps:$4 sm:$0xff]  }
  0x28   : > { %1683 = vmatprep.subr.bf16.mxu0 %v5375_v24  ;;  %1855 = vmatprep.subr.bf16.mxu1 %v5377_v25  ;;  %v5440_v1 = vld [vmem:[%s7883_s2 + $0x204] ss:$16 sps:$4 sm:$0xff]   ;;  %v5443_v2 = vld [vmem:[%s7883_s2 + $0x20c] ss:$16 sps:$4 sm:$0xff]   ;;  %v5438_v4 = vld [vmem:[%s7883_s2 + $0x200] ss:$16 sps:$4 sm:$0xff]  }
  0x29   : > { %v5435_v3 = vld [vmem:[%s6405_s23] ss:$28 sps:$4 sm:$0xff]   ;;  %v5441_v5 = vld [vmem:[%s7883_s2 + $0x208] ss:$16 sps:$4 sm:$0xff]   ;;  %v5446_v6 = vld [vmem:[%s7883_s2 + $0x224] ss:$16 sps:$4 sm:$0xff]  }
  0x2a   : > { %v5449_v7 = vld [vmem:[%s7883_s2 + $0x22c] ss:$16 sps:$4 sm:$0xff]   ;;  %v5444_v8 = vld [vmem:[%s7883_s2 + $0x220] ss:$16 sps:$4 sm:$0xff]   ;;  %v5447_v9 = vld [vmem:[%s7883_s2 + $0x228] ss:$16 sps:$4 sm:$0xff]  }
  0x2b   : > { %1684 = vmatpush1.bf16.msra.mxu0 %v5379_v26  ;;  %1856 = vmatpush1.bf16.msra.mxu1 %v5380_v27  ;;  %v5452_v10 = vld [vmem:[%s7883_s2 + $0x244] ss:$16 sps:$4 sm:$0xff]   ;;  %v5455_v11 = vld [vmem:[%s7883_s2 + $0x24c] ss:$16 sps:$4 sm:$0xff]   ;;  %v5450_v12 = vld [vmem:[%s7883_s2 + $0x240] ss:$16 sps:$4 sm:$0xff]  }
  0x2c   : > { %1685 = vmatprep.subr.bf16.mxu0 %v5381_v28  ;;  %1857 = vmatprep.subr.bf16.mxu1 %v5383_v29  ;;  %v5453_v13 = vld [vmem:[%s7883_s2 + $0x248] ss:$16 sps:$4 sm:$0xff]   ;;  %v5458_v14 = vld [vmem:[%s7883_s2 + $0x264] ss:$16 sps:$4 sm:$0xff]   ;;  %v5461_v15 = vld [vmem:[%s7883_s2 + $0x26c] ss:$16 sps:$4 sm:$0xff]  }
  0x2d   : > { %v5456_v16 = vld [vmem:[%s7883_s2 + $0x260] ss:$16 sps:$4 sm:$0xff]   ;;  %v5459_v17 = vld [vmem:[%s7883_s2 + $0x268] ss:$16 sps:$4 sm:$0xff]   ;;  %v5464_v18 = vld [vmem:[%s7883_s2 + $0x284] ss:$16 sps:$4 sm:$0xff]  }
  0x2e   : > { %v5467_v19 = vld [vmem:[%s7883_s2 + $0x28c] ss:$16 sps:$4 sm:$0xff]   ;;  %v5462_v20 = vld [vmem:[%s7883_s2 + $0x280] ss:$16 sps:$4 sm:$0xff]   ;;  %v5465_v21 = vld [vmem:[%s7883_s2 + $0x288] ss:$16 sps:$4 sm:$0xff]  }
  0x2f   : > { %1686 = vmatpush1.bf16.msra.mxu0 %v5385_v30  ;;  %1858 = vmatpush1.bf16.msra.mxu1 %v5386_v31  ;;  %v5470_v22 = vld [vmem:[%s7883_s2 + $0x2a4] ss:$16 sps:$4 sm:$0xff]   ;;  %v5473_v23 = vld [vmem:[%s7883_s2 + $0x2ac] ss:$16 sps:$4 sm:$0xff]   ;;  %v5468_v24 = vld [vmem:[%s7883_s2 + $0x2a0] ss:$16 sps:$4 sm:$0xff]  }
  0x30   : > { %1687 = vmatprep.subr.bf16.mxu0 %v5387_v32  ;;  %1859 = vmatprep.subr.bf16.mxu1 %v5389_v33  ;;  %v5471_v25 = vld [vmem:[%s7883_s2 + $0x2a8] ss:$16 sps:$4 sm:$0xff]   ;;  %v5476_v26 = vld [vmem:[%s7883_s2 + $0x2c4] ss:$16 sps:$4 sm:$0xff]   ;;  %v5479_v27 = vld [vmem:[%s7883_s2 + $0x2cc] ss:$16 sps:$4 sm:$0xff]  }
  0x31   : > { %v5474_v28 = vld [vmem:[%s7883_s2 + $0x2c0] ss:$16 sps:$4 sm:$0xff]   ;;  %v5477_v29 = vld [vmem:[%s7883_s2 + $0x2c8] ss:$16 sps:$4 sm:$0xff]   ;;  %v5482_v31 = vld [vmem:[%s7883_s2 + $0x2e4] ss:$16 sps:$4 sm:$0xff]  }
  0x32   : > { %v5536_v30 = vld [vmem:[%s6405_s23 + $0xc] ss:$28 sps:$4 sm:$0xff]   ;;  %v5480_v33 = vld [vmem:[%s7883_s2 + $0x2e0] ss:$16 sps:$4 sm:$0xff]   ;;  %vm2527_vm9 = vcmask 523264   ;;  %s5141_s19 = sshll.u32 %s6236_s21, 8 }
  0x33   : > { %1688 = vmatpush1.bf16.msra.mxu0 %v5391_v34  ;;  %1860 = vmatpush1.bf16.msra.mxu1 %v5392_v35  ;;  %v5485_v32 = vld [vmem:[%s7883_s2 + $0x2ec] ss:$16 sps:$4 sm:$0xff]   ;;  %v5483_v34 = vld [vmem:[%s7883_s2 + $0x2e8] ss:$16 sps:$4 sm:$0xff]   ;;  %v5488_v35 = vld [vmem:[%s7883_s2 + $0x304] ss:$16 sps:$4 sm:$0xff]   ;;  %s7788_s24 = scalar_lea.hbm %s7892_s11, %s5141_s19 }
  0x34   : > { %1689 = vmatprep.subr.bf16.mxu0 %v5393_v36  ;;  %1861 = vmatprep.subr.bf16.mxu1 %v5395_v37  ;;  %v5491_v36 = vld [vmem:[%s7883_s2 + $0x30c] ss:$16 sps:$4 sm:$0xff]   ;;  %v5486_v37 = vld [vmem:[%s7883_s2 + $0x300] ss:$16 sps:$4 sm:$0xff]  }
  0x35   : > { %v5509_v48 = vld [vmem:[%s7883_s2 + $0x36c] ss:$16 sps:$4 sm:$0xff]  }
  0x37   : > { %1690 = vmatpush1.bf16.msra.mxu0 %v5397_v38  ;;  %1862 = vmatpush1.bf16.msra.mxu1 %v5398_v39  ;;  %v5489_v38 = vld [vmem:[%s7883_s2 + $0x308] ss:$16 sps:$4 sm:$0xff]   ;;  %v5494_v39 = vld [vmem:[%s7883_s2 + $0x324] ss:$16 sps:$4 sm:$0xff]  }
  0x38   : > { %1691 = vmatprep.subr.bf16.mxu0 %v5399_v40  ;;  %1863 = vmatprep.subr.bf16.mxu1 %v5401_v41  ;;  %v5497_v40 = vld [vmem:[%s7883_s2 + $0x32c] ss:$16 sps:$4 sm:$0xff]   ;;  %v5492_v41 = vld [vmem:[%s7883_s2 + $0x320] ss:$16 sps:$4 sm:$0xff]  }
  0x3b   : > { %1692 = vmatpush1.bf16.msra.mxu0 %v5403_v42  ;;  %1864 = vmatpush1.bf16.msra.mxu1 %v5404_v43  ;;  %v5495_v42 = vld [vmem:[%s7883_s2 + $0x328] ss:$16 sps:$4 sm:$0xff]   ;;  %v5500_v43 = vld [vmem:[%s7883_s2 + $0x344] ss:$16 sps:$4 sm:$0xff]  }
  0x3c   : > { %1693 = vmatprep.subr.bf16.mxu0 %v5405_v44  ;;  %1865 = vmatprep.subr.bf16.mxu1 %v5407_v45  ;;  %v5503_v44 = vld [vmem:[%s7883_s2 + $0x34c] ss:$16 sps:$4 sm:$0xff]   ;;  %v5498_v45 = vld [vmem:[%s7883_s2 + $0x340] ss:$16 sps:$4 sm:$0xff]  }
  0x3f   : > { %1694 = vmatpush1.bf16.msra.mxu0 %v5409_v46  ;;  %1866 = vmatpush1.bf16.msra.mxu1 %v5410_v47  ;;  %v5501_v46 = vld [vmem:[%s7883_s2 + $0x348] ss:$16 sps:$4 sm:$0xff]   ;;  %v5506_v47 = vld [vmem:[%s7883_s2 + $0x364] ss:$16 sps:$4 sm:$0xff]  }
  0x40   : > { %1695 = vmatprep.subr.bf16.mxu0 %v5411_v49  ;;  %1867 = vmatprep.subr.bf16.mxu1 %v5413_v50  ;;  %v5504_v49 = vld [vmem:[%s7883_s2 + $0x360] ss:$16 sps:$4 sm:$0xff]   ;;  %v5507_v50 = vld [vmem:[%s7883_s2 + $0x368] ss:$16 sps:$4 sm:$0xff]  }
  0x43   : > { %1696 = vmatpush1.bf16.msra.mxu0 %v5415_v51  ;;  %1868 = vmatpush1.bf16.msra.mxu1 %v5416_v52  ;;  %v5512_v51 = vld [vmem:[%s7883_s2 + $0x384] ss:$16 sps:$4 sm:$0xff]   ;;  %v5515_v52 = vld [vmem:[%s7883_s2 + $0x38c] ss:$16 sps:$4 sm:$0xff]  }
  0x44   : > { %1697 = vmatprep.subr.bf16.mxu0 %v5417_v53  ;;  %1869 = vmatprep.subr.bf16.mxu1 %v5419_v54  ;;  %v5510_v53 = vld [vmem:[%s7883_s2 + $0x380] ss:$16 sps:$4 sm:$0xff]   ;;  %v5513_v54 = vld [vmem:[%s7883_s2 + $0x388] ss:$16 sps:$4 sm:$0xff]  }
  0x47   : > { %1698 = vmatpush1.bf16.msra.mxu0 %v5421_v55  ;;  %1870 = vmatpush1.bf16.msra.mxu1 %v5422_v56  ;;  %v5518_v55 = vld [vmem:[%s7883_s2 + $0x3a4] ss:$16 sps:$4 sm:$0xff]   ;;  %v5521_v56 = vld [vmem:[%s7883_s2 + $0x3ac] ss:$16 sps:$4 sm:$0xff]  }
  0x48   : > { %1699 = vmatprep.subr.bf16.mxu0 %v5423_v57  ;;  %1871 = vmatprep.subr.bf16.mxu1 %v5425_v58  ;;  %v5516_v57 = vld [vmem:[%s7883_s2 + $0x3a0] ss:$16 sps:$4 sm:$0xff]   ;;  %v5519_v58 = vld [vmem:[%s7883_s2 + $0x3a8] ss:$16 sps:$4 sm:$0xff]  }
  0x4b   : > { %1700 = vmatpush1.bf16.msra.mxu0 %v5427_v59  ;;  %1872 = vmatpush1.bf16.msra.mxu1 %v5428_v60  ;;  %v5524_v59 = vld [vmem:[%s7883_s2 + $0x3c4] ss:$16 sps:$4 sm:$0xff]   ;;  %v5527_v60 = vld [vmem:[%s7883_s2 + $0x3cc] ss:$16 sps:$4 sm:$0xff]  }
  0x4c   : > { %1701 = vmatprep.subr.bf16.mxu0 %v5429_v61  ;;  %1873 = vmatprep.subr.bf16.mxu1 %v5431_v62  ;;  %v5522_v61 = vld [vmem:[%s7883_s2 + $0x3c0] ss:$16 sps:$4 sm:$0xff]   ;;  %v5525_v62 = vld [vmem:[%s7883_s2 + $0x3c8] ss:$16 sps:$4 sm:$0xff]  }
  0x4f   : > { %1702 = vmatpush1.bf16.msra.mxu0 %v5433_v63  ;;  %1874 = vmatpush1.bf16.msra.mxu1 %v5434_v0  ;;  %v5530_v63 = vld [vmem:[%s7883_s2 + $0x3e4] ss:$16 sps:$4 sm:$0xff]   ;;  %v5533_v0 = vld [vmem:[%s7883_s2 + $0x3ec] ss:$16 sps:$4 sm:$0xff]  }
  0x50   : > { %1714 = vmatprep.subr.bf16.mxu0 %v5440_v1  ;;  %1886 = vmatprep.subr.bf16.mxu1 %v5443_v2  ;;  %v5528_v1 = vld [vmem:[%s7883_s2 + $0x3e0] ss:$16 sps:$4 sm:$0xff]   ;;  %v5531_v2 = vld [vmem:[%s7883_s2 + $0x3e8] ss:$16 sps:$4 sm:$0xff]  }
  0x52   : > { %1704 = vmatmul.mubr.bf16.vlgmr.msra.gmra.mrb[0].mxu0 %v5435_v3  ;;  %1876 = vmatmul.mubr.bf16.vlgmr.msra.gmra.mrb[0].mxu1 %v5435_v3  ;;  %v5539_v3 = vld [vmem:[%s7883_s2 + $0x404] ss:$16 sps:$4 sm:$0xff]  }
  0x53   : > { %1715 = vmatpush1.bf16.msra.mxu0 %v5438_v4  ;;  %1887 = vmatpush1.bf16.msra.mxu1 %v5441_v5  ;;  %v5542_v4 = vld [vmem:[%s7883_s2 + $0x40c] ss:$16 sps:$4 sm:$0xff]   ;;  %v5534_v5 = vld [vmem:[%s6405_s23 + $0x8] ss:$28 sps:$4 sm:$0xff]  }
  0x54   : > { %1716 = vmatprep.subr.bf16.mxu0 %v5446_v6  ;;  %1888 = vmatprep.subr.bf16.mxu1 %v5449_v7  ;;  %v5537_v6 = vld [vmem:[%s7883_s2 + $0x400] ss:$16 sps:$4 sm:$0xff]   ;;  %v5540_v7 = vld [vmem:[%s7883_s2 + $0x408] ss:$16 sps:$4 sm:$0xff]  }
  0x55   : > { %1746 = vmatprep.mubr.bf16.mxu0 %v5536_v30  ;;  %1918 = vmatprep.mubr.bf16.mxu1 %v5536_v30  ;;  %v5578_v30 = vld [vmem:[%s7883_s2 + $0x4cc] ss:$16 sps:$4 sm:$0xff]  }
  0x57   : > { %1717 = vmatpush1.bf16.msra.mxu0 %v5444_v8  ;;  %1889 = vmatpush1.bf16.msra.mxu1 %v5447_v9  ;;  %v5545_v8 = vld [vmem:[%s7883_s2 + $0x424] ss:$16 sps:$4 sm:$0xff]   ;;  %v5548_v9 = vld [vmem:[%s7883_s2 + $0x42c] ss:$16 sps:$4 sm:$0xff]  }
  0x58   : > { %1718 = vmatprep.subr.bf16.mxu0 %v5452_v10  ;;  %1890 = vmatprep.subr.bf16.mxu1 %v5455_v11  ;;  %v5543_v10 = vld [vmem:[%s7883_s2 + $0x420] ss:$16 sps:$4 sm:$0xff]   ;;  %v5546_v11 = vld [vmem:[%s7883_s2 + $0x428] ss:$16 sps:$4 sm:$0xff]  }
  0x5b   : > { %1719 = vmatpush1.bf16.msra.mxu0 %v5450_v12  ;;  %1891 = vmatpush1.bf16.msra.mxu1 %v5453_v13  ;;  %v5635_v12 = vld [vmem:[%s6405_s23 + $0x14] ss:$28 sps:$4 sm:$0xff]  }
  0x5c   : > { %1720 = vmatprep.subr.bf16.mxu0 %v5458_v14  ;;  %1892 = vmatprep.subr.bf16.mxu1 %v5461_v15  ;;  %v5551_v13 = vld [vmem:[%s7883_s2 + $0x444] ss:$16 sps:$4 sm:$0xff]   ;;  %v5554_v14 = vld [vmem:[%s7883_s2 + $0x44c] ss:$16 sps:$4 sm:$0xff]   ;;  %v5549_v15 = vld [vmem:[%s7883_s2 + $0x440] ss:$16 sps:$4 sm:$0xff]  }
  0x5f   : > { %1721 = vmatpush1.bf16.msra.mxu0 %v5456_v16  ;;  %1893 = vmatpush1.bf16.msra.mxu1 %v5459_v17  ;;  %v5552_v16 = vld [vmem:[%s7883_s2 + $0x448] ss:$16 sps:$4 sm:$0xff]   ;;  %v5557_v17 = vld [vmem:[%s7883_s2 + $0x464] ss:$16 sps:$4 sm:$0xff]  }
  0x60   : > { %1722 = vmatprep.subr.bf16.mxu0 %v5464_v18  ;;  %1894 = vmatprep.subr.bf16.mxu1 %v5467_v19  ;;  %v5560_v18 = vld [vmem:[%s7883_s2 + $0x46c] ss:$16 sps:$4 sm:$0xff]   ;;  %v5555_v19 = vld [vmem:[%s7883_s2 + $0x460] ss:$16 sps:$4 sm:$0xff]  }
  0x63   : > { %1723 = vmatpush1.bf16.msra.mxu0 %v5462_v20  ;;  %1895 = vmatpush1.bf16.msra.mxu1 %v5465_v21  ;;  %v5558_v20 = vld [vmem:[%s7883_s2 + $0x468] ss:$16 sps:$4 sm:$0xff]   ;;  %v5563_v21 = vld [vmem:[%s7883_s2 + $0x484] ss:$16 sps:$4 sm:$0xff]  }
  0x64   : > { %1724 = vmatprep.subr.bf16.mxu0 %v5470_v22  ;;  %1896 = vmatprep.subr.bf16.mxu1 %v5473_v23  ;;  %v5566_v22 = vld [vmem:[%s7883_s2 + $0x48c] ss:$16 sps:$4 sm:$0xff]   ;;  %v5561_v23 = vld [vmem:[%s7883_s2 + $0x480] ss:$16 sps:$4 sm:$0xff]  }
  0x67   : > { %1725 = vmatpush1.bf16.msra.mxu0 %v5468_v24  ;;  %1897 = vmatpush1.bf16.msra.mxu1 %v5471_v25  ;;  %v5564_v24 = vld [vmem:[%s7883_s2 + $0x488] ss:$16 sps:$4 sm:$0xff]   ;;  %v5569_v25 = vld [vmem:[%s7883_s2 + $0x4a4] ss:$16 sps:$4 sm:$0xff]  }
  0x68   : > { %1726 = vmatprep.subr.bf16.mxu0 %v5476_v26  ;;  %1898 = vmatprep.subr.bf16.mxu1 %v5479_v27  ;;  %v5572_v26 = vld [vmem:[%s7883_s2 + $0x4ac] ss:$16 sps:$4 sm:$0xff]   ;;  %v5567_v27 = vld [vmem:[%s7883_s2 + $0x4a0] ss:$16 sps:$4 sm:$0xff]  }
  0x6b   : > { %1727 = vmatpush1.bf16.msra.mxu0 %v5474_v28  ;;  %1899 = vmatpush1.bf16.msra.mxu1 %v5477_v29  ;;  %v5570_v28 = vld [vmem:[%s7883_s2 + $0x4a8] ss:$16 sps:$4 sm:$0xff]   ;;  %v5575_v29 = vld [vmem:[%s7883_s2 + $0x4c4] ss:$16 sps:$4 sm:$0xff]  }
  0x6c   : > { %1728 = vmatprep.subr.bf16.mxu0 %v5482_v31  ;;  %1900 = vmatprep.subr.bf16.mxu1 %v5485_v32  ;;  %v5573_v31 = vld [vmem:[%s7883_s2 + $0x4c0] ss:$16 sps:$4 sm:$0xff]   ;;  %v5576_v32 = vld [vmem:[%s7883_s2 + $0x4c8] ss:$16 sps:$4 sm:$0xff]  }
  0x6f   : > { %1729 = vmatpush1.bf16.msra.mxu0 %v5480_v33  ;;  %1901 = vmatpush1.bf16.msra.mxu1 %v5483_v34  ;;  %v5581_v33 = vld [vmem:[%s7883_s2 + $0x4e4] ss:$16 sps:$4 sm:$0xff]   ;;  %v5584_v34 = vld [vmem:[%s7883_s2 + $0x4ec] ss:$16 sps:$4 sm:$0xff]  }
  0x70   : > { %1730 = vmatprep.subr.bf16.mxu0 %v5488_v35  ;;  %1902 = vmatprep.subr.bf16.mxu1 %v5491_v36  ;;  %v5579_v35 = vld [vmem:[%s7883_s2 + $0x4e0] ss:$16 sps:$4 sm:$0xff]   ;;  %v5582_v36 = vld [vmem:[%s7883_s2 + $0x4e8] ss:$16 sps:$4 sm:$0xff]  }
  0x73   : > { %1731 = vmatpush1.bf16.msra.mxu0 %v5486_v37  ;;  %1903 = vmatpush1.bf16.msra.mxu1 %v5489_v38  ;;  %v5587_v37 = vld [vmem:[%s7883_s2 + $0x504] ss:$16 sps:$4 sm:$0xff]   ;;  %v5590_v38 = vld [vmem:[%s7883_s2 + $0x50c] ss:$16 sps:$4 sm:$0xff]  }
  0x74   : > { %1732 = vmatprep.subr.bf16.mxu0 %v5494_v39  ;;  %1904 = vmatprep.subr.bf16.mxu1 %v5497_v40  ;;  %v5585_v39 = vld [vmem:[%s7883_s2 + $0x500] ss:$16 sps:$4 sm:$0xff]   ;;  %v5588_v40 = vld [vmem:[%s7883_s2 + $0x508] ss:$16 sps:$4 sm:$0xff]  }
  0x77   : > { %1733 = vmatpush1.bf16.msra.mxu0 %v5492_v41  ;;  %1905 = vmatpush1.bf16.msra.mxu1 %v5495_v42  ;;  %v5593_v41 = vld [vmem:[%s7883_s2 + $0x524] ss:$16 sps:$4 sm:$0xff]   ;;  %v5596_v42 = vld [vmem:[%s7883_s2 + $0x52c] ss:$16 sps:$4 sm:$0xff]  }
  0x78   : > { %1734 = vmatprep.subr.bf16.mxu0 %v5500_v43  ;;  %1906 = vmatprep.subr.bf16.mxu1 %v5503_v44  ;;  %v5591_v43 = vld [vmem:[%s7883_s2 + $0x520] ss:$16 sps:$4 sm:$0xff]   ;;  %v5594_v44 = vld [vmem:[%s7883_s2 + $0x528] ss:$16 sps:$4 sm:$0xff]  }
  0x7b   : > { %1735 = vmatpush1.bf16.msra.mxu0 %v5498_v45  ;;  %1907 = vmatpush1.bf16.msra.mxu1 %v5501_v46  ;;  %v5599_v45 = vld [vmem:[%s7883_s2 + $0x544] ss:$16 sps:$4 sm:$0xff]   ;;  %v5602_v46 = vld [vmem:[%s7883_s2 + $0x54c] ss:$16 sps:$4 sm:$0xff]  }
  0x7c   : > { %1736 = vmatprep.subr.bf16.mxu0 %v5506_v47  ;;  %1908 = vmatprep.subr.bf16.mxu1 %v5509_v48  ;;  %v5597_v47 = vld [vmem:[%s7883_s2 + $0x540] ss:$16 sps:$4 sm:$0xff]   ;;  %v5600_v48 = vld [vmem:[%s7883_s2 + $0x548] ss:$16 sps:$4 sm:$0xff]  }
  0x7f   : > { %1737 = vmatpush1.bf16.msra.mxu0 %v5504_v49  ;;  %1909 = vmatpush1.bf16.msra.mxu1 %v5507_v50  ;;  %v5605_v49 = vld [vmem:[%s7883_s2 + $0x564] ss:$16 sps:$4 sm:$0xff]   ;;  %v5608_v50 = vld [vmem:[%s7883_s2 + $0x56c] ss:$16 sps:$4 sm:$0xff]  }
  0x80   : > { %1738 = vmatprep.subr.bf16.mxu0 %v5512_v51  ;;  %1910 = vmatprep.subr.bf16.mxu1 %v5515_v52  ;;  %v5603_v51 = vld [vmem:[%s7883_s2 + $0x560] ss:$16 sps:$4 sm:$0xff]   ;;  %v5606_v52 = vld [vmem:[%s7883_s2 + $0x568] ss:$16 sps:$4 sm:$0xff]  }
  0x83   : > { %1739 = vmatpush1.bf16.msra.mxu0 %v5510_v53  ;;  %1911 = vmatpush1.bf16.msra.mxu1 %v5513_v54  ;;  %v5611_v53 = vld [vmem:[%s7883_s2 + $0x584] ss:$16 sps:$4 sm:$0xff]   ;;  %v5614_v54 = vld [vmem:[%s7883_s2 + $0x58c] ss:$16 sps:$4 sm:$0xff]  }
  0x84   : > { %1740 = vmatprep.subr.bf16.mxu0 %v5518_v55  ;;  %1912 = vmatprep.subr.bf16.mxu1 %v5521_v56  ;;  %v5609_v55 = vld [vmem:[%s7883_s2 + $0x580] ss:$16 sps:$4 sm:$0xff]   ;;  %v5612_v56 = vld [vmem:[%s7883_s2 + $0x588] ss:$16 sps:$4 sm:$0xff]  }
  0x87   : > { %1741 = vmatpush1.bf16.msra.mxu0 %v5516_v57  ;;  %1913 = vmatpush1.bf16.msra.mxu1 %v5519_v58  ;;  %v5617_v57 = vld [vmem:[%s7883_s2 + $0x5a4] ss:$16 sps:$4 sm:$0xff]   ;;  %v5620_v58 = vld [vmem:[%s7883_s2 + $0x5ac] ss:$16 sps:$4 sm:$0xff]  }
  0x88   : > { %1742 = vmatprep.subr.bf16.mxu0 %v5524_v59  ;;  %1914 = vmatprep.subr.bf16.mxu1 %v5527_v60  ;;  %v5615_v59 = vld [vmem:[%s7883_s2 + $0x5a0] ss:$16 sps:$4 sm:$0xff]   ;;  %v5618_v60 = vld [vmem:[%s7883_s2 + $0x5a8] ss:$16 sps:$4 sm:$0xff]  }
  0x8b   : > { %1743 = vmatpush1.bf16.msra.mxu0 %v5522_v61  ;;  %1915 = vmatpush1.bf16.msra.mxu1 %v5525_v62  ;;  %v5623_v61 = vld [vmem:[%s7883_s2 + $0x5c4] ss:$16 sps:$4 sm:$0xff]   ;;  %v5626_v62 = vld [vmem:[%s7883_s2 + $0x5cc] ss:$16 sps:$4 sm:$0xff]  }
  0x8c   : > { %1744 = vmatprep.subr.bf16.mxu0 %v5530_v63  ;;  %1916 = vmatprep.subr.bf16.mxu1 %v5533_v0  ;;  %v5621_v63 = vld [vmem:[%s7883_s2 + $0x5c0] ss:$16 sps:$4 sm:$0xff]   ;;  %v5624_v0 = vld [vmem:[%s7883_s2 + $0x5c8] ss:$16 sps:$4 sm:$0xff]  }
  0x8f   : > { %1745 = vmatpush1.bf16.msra.mxu0 %v5528_v1  ;;  %1917 = vmatpush1.bf16.msra.mxu1 %v5531_v2  ;;  %v5629_v1 = vld [vmem:[%s7883_s2 + $0x5e4] ss:$16 sps:$4 sm:$0xff]   ;;  %v5632_v2 = vld [vmem:[%s7883_s2 + $0x5ec] ss:$16 sps:$4 sm:$0xff]  }
  0x90   : > { %1757 = vmatprep.subr.bf16.mxu0 %v5539_v3  ;;  %1929 = vmatprep.subr.bf16.mxu1 %v5542_v4  ;;  %v5627_v3 = vld [vmem:[%s7883_s2 + $0x5e0] ss:$16 sps:$4 sm:$0xff]   ;;  %v5630_v4 = vld [vmem:[%s7883_s2 + $0x5e8] ss:$16 sps:$4 sm:$0xff]  }
  0x92   : > { %1747 = vmatmul.mubr.bf16.vlgmr.msra.gmra.mrb[0].mxu0 %v5534_v5  ;;  %1919 = vmatmul.mubr.bf16.vlgmr.msra.gmra.mrb[0].mxu1 %v5534_v5  ;;  %v5638_v5 = vld [vmem:[%s7883_s2 + $0x604] ss:$16 sps:$4 sm:$0xff]  }
  0x93   : > { %1758 = vmatpush1.bf16.msra.mxu0 %v5537_v6  ;;  %1930 = vmatpush1.bf16.msra.mxu1 %v5540_v7  ;;  %v5641_v6 = vld [vmem:[%s7883_s2 + $0x60c] ss:$16 sps:$4 sm:$0xff]  }
  0x94   : > { %1759 = vmatprep.subr.bf16.mxu0 %v5545_v8  ;;  %1931 = vmatprep.subr.bf16.mxu1 %v5548_v9  ;;  %v5633_v7 = vld [vmem:[%s6405_s23 + $0x10] ss:$28 sps:$4 sm:$0xff]   ;;  %v5639_v9 = vld [vmem:[%s7883_s2 + $0x608] ss:$16 sps:$4 sm:$0xff]  }
  0x95   : > { %1789 = vmatprep.mubr.bf16.mxu0 %v5635_v12  ;;  %1961 = vmatprep.mubr.bf16.mxu1 %v5635_v12  ;;  %v5636_v8 = vld [vmem:[%s7883_s2 + $0x600] ss:$16 sps:$4 sm:$0xff]   ;;  %v5642_v12 = vld [vmem:[%s6405_s23 + $0x18] ss:$28 sps:$4 sm:$0xff]   ;;  %s7017_s23 = sand.u32 1, %s6137_s18  }
  0x96   : > { %s4648_s13 = sshll.u32 %s7017_s23, 4  ;;  %s5286_s12 = smul.u32 112, %s7017_s23 }
  0x97   : > { %1760 = vmatpush1.bf16.msra.mxu0 %v5543_v10  ;;  %1932 = vmatpush1.bf16.msra.mxu1 %v5546_v11  ;;  %v5643_v10 = vld [vmem:[%s7885_s4 + $0x40] sm:$0xff]   ;;  %v6147_v11 = vmov 0   ;;  %s7023_s26 = scalar_lea.vmem [#allocation4], %s4648_s13  ;;  %s6149_s13 = smov [#allocation4]  }
  0x98   : > { %1761 = vmatprep.subr.bf16.mxu0 %v5551_v13  ;;  %1933 = vmatprep.subr.bf16.mxu1 %v5554_v14  ;;  %v5644_v13 = vld [vmem:[%s7885_s4] sm:$0xff]   ;;  %v5645_v14 = vld [vmem:[%s7885_s4 + $0x48] sm:$0xff]   ;;  %s7774_s14 = scalar_lea.vmem [#allocation2], %s5286_s12 }
  0x9b   : > { %1762 = vmatpush1.bf16.msra.mxu0 %v5549_v15  ;;  %1934 = vmatpush1.bf16.msra.mxu1 %v5552_v16  ;;  %v5646_v15 = vld [vmem:[%s7885_s4 + $0x8] sm:$0xff]   ;;  %v5647_v16 = vld [vmem:[%s7885_s4 + $0x50] sm:$0xff]  }
  0x9c   : > { %1763 = vmatprep.subr.bf16.mxu0 %v5557_v17  ;;  %1935 = vmatprep.subr.bf16.mxu1 %v5560_v18  ;;  %v5648_v17 = vld [vmem:[%s7885_s4 + $0x10] sm:$0xff]   ;;  %v5649_v18 = vld [vmem:[%s7885_s4 + $0x58] sm:$0xff]  }
  0x9f   : > { %1764 = vmatpush1.bf16.msra.mxu0 %v5555_v19  ;;  %1936 = vmatpush1.bf16.msra.mxu1 %v5558_v20  ;;  %v5650_v19 = vld [vmem:[%s7885_s4 + $0x18] sm:$0xff]   ;;  %v5651_v20 = vld [vmem:[%s7885_s4 + $0x60] sm:$0xff]  }
  0xa0   : > { %1765 = vmatprep.subr.bf16.mxu0 %v5563_v21  ;;  %1937 = vmatprep.subr.bf16.mxu1 %v5566_v22  ;;  %v5652_v21 = vld [vmem:[%s7885_s4 + $0x20] sm:$0xff]   ;;  %v5653_v22 = vld [vmem:[%s7885_s4 + $0x68] sm:$0xff]  }
  0xa3   : > { %1766 = vmatpush1.bf16.msra.mxu0 %v5561_v23  ;;  %1938 = vmatpush1.bf16.msra.mxu1 %v5564_v24  ;;  %v5654_v23 = vld [vmem:[%s7885_s4 + $0x28] sm:$0xff]   ;;  %v5655_v24 = vld [vmem:[%s7885_s4 + $0x70] sm:$0xff]  }
  0xa4   : > { %1767 = vmatprep.subr.bf16.mxu0 %v5569_v25  ;;  %1939 = vmatprep.subr.bf16.mxu1 %v5572_v26  ;;  %v5656_v25 = vld [vmem:[%s7885_s4 + $0x30] sm:$0xff]   ;;  %v5657_v26 = vld [vmem:[%s7885_s4 + $0x78] sm:$0xff]  }
  0xa7   : > { %1768 = vmatpush1.bf16.msra.mxu0 %v5567_v27  ;;  %1940 = vmatpush1.bf16.msra.mxu1 %v5570_v28  ;;  %v5658_v27 = vld [vmem:[%s7885_s4 + $0x38] sm:$0xff]   ;;  %v5659_v28 = vld [vmem:[%s7885_s4 + $0xc0] sm:$0xff]  }
  0xa8   : > { %1769 = vmatprep.subr.bf16.mxu0 %v5575_v29  ;;  %1941 = vmatprep.subr.bf16.mxu1 %v5578_v30  ;;  %v632_v29 = vlaneseq }
  0xaa   : > { %v6923_v30 = vshrl.u32 %v632_v29, 7  ;;  %v5677_v29 = vld [vmem:[%s7887_s6 + $0x4] ss:$16 sps:$4 sm:$0xff]  }
  0xab   : > { %1770 = vmatpush1.bf16.msra.mxu0 %v5573_v31  ;;  %1942 = vmatpush1.bf16.msra.mxu1 %v5576_v32 }
  0xac   : > { %1771 = vmatprep.subr.bf16.mxu0 %v5581_v33  ;;  %1943 = vmatprep.subr.bf16.mxu1 %v5584_v34  ;;  %v6926_v31 = vsub.s32 0, %v6923_v30  ;;  %v6929_v32 = vsub.s32 2, %v6923_v30  ;;  %v630_v33 = vld [vmem:[%s7884_s3] sm:$0xf]  ;;  %v6935_v34 = vsub.s32 1, %v6923_v30 }
  0xaf   : > { %1772 = vmatpush1.bf16.msra.mxu0 %v5579_v35  ;;  %1944 = vmatpush1.bf16.msra.mxu1 %v5582_v36  ;;  %v6938_v35 = vsub.s32 3, %v6923_v30  ;;  %v635_v36 = vrot.slane %v630_v33, %v6926_v31 }
  0xb0   : > { %1773 = vmatprep.subr.bf16.mxu0 %v5587_v37  ;;  %1945 = vmatprep.subr.bf16.mxu1 %v5590_v38  ;;  %v643_v37 = vrot.slane %v630_v33, %v6929_v32  ;;  %v639_v38 = vrot.slane %v630_v33, %v6935_v34 }
  0xb3   : > { %1774 = vmatpush1.bf16.msra.mxu0 %v5585_v39  ;;  %1946 = vmatpush1.bf16.msra.mxu1 %v5588_v40  ;;  %v647_v39 = vrot.slane %v630_v33, %v6938_v35  ;;  %v5678_v33 = vld [vmem:[%s7887_s6 + $0x8] ss:$16 sps:$4 sm:$0xff]  }
  0xb4   : > { %1775 = vmatprep.subr.bf16.mxu0 %v5593_v41  ;;  %1947 = vmatprep.subr.bf16.mxu1 %v5596_v42 }
  0xb7   : > { %1776 = vmatpush1.bf16.msra.mxu0 %v5591_v43  ;;  %1948 = vmatpush1.bf16.msra.mxu1 %v5594_v44 }
  0xb8   : > { %1777 = vmatprep.subr.bf16.mxu0 %v5599_v45  ;;  %1949 = vmatprep.subr.bf16.mxu1 %v5602_v46 }
  0xbb   : > { %1778 = vmatpush1.bf16.msra.mxu0 %v5597_v47  ;;  %1950 = vmatpush1.bf16.msra.mxu1 %v5600_v48 }
  0xbc   : > { %1779 = vmatprep.subr.bf16.mxu0 %v5605_v49  ;;  %1951 = vmatprep.subr.bf16.mxu1 %v5608_v50 }
  0xbf   : > { %1780 = vmatpush1.bf16.msra.mxu0 %v5603_v51  ;;  %1952 = vmatpush1.bf16.msra.mxu1 %v5606_v52 }
  0xc0   : > { %1781 = vmatprep.subr.bf16.mxu0 %v5611_v53  ;;  %1953 = vmatprep.subr.bf16.mxu1 %v5614_v54 }
  0xc3   : > { %1782 = vmatpush1.bf16.msra.mxu0 %v5609_v55  ;;  %1954 = vmatpush1.bf16.msra.mxu1 %v5612_v56 }
  0xc4   : > { %1783 = vmatprep.subr.bf16.mxu0 %v5617_v57  ;;  %1955 = vmatprep.subr.bf16.mxu1 %v5620_v58 }
  0xc7   : > { %1784 = vmatpush1.bf16.msra.mxu0 %v5615_v59  ;;  %1956 = vmatpush1.bf16.msra.mxu1 %v5618_v60 }
  0xc8   : > { %1785 = vmatprep.subr.bf16.mxu0 %v5623_v61  ;;  %1957 = vmatprep.subr.bf16.mxu1 %v5626_v62 }
  0xcb   : > { %1786 = vmatpush1.bf16.msra.mxu0 %v5621_v63  ;;  %1958 = vmatpush1.bf16.msra.mxu1 %v5624_v0 }
  0xcc   : > { %1787 = vmatprep.subr.bf16.mxu0 %v5629_v1  ;;  %1959 = vmatprep.subr.bf16.mxu1 %v5632_v2 }
  0xcf   : > { %1788 = vmatpush1.bf16.msra.mxu0 %v5627_v3  ;;  %1960 = vmatpush1.bf16.msra.mxu1 %v5630_v4 }
  0xd0   : > { %1800 = vmatprep.subr.bf16.mxu0 %v5638_v5  ;;  %1972 = vmatprep.subr.bf16.mxu1 %v5641_v6 }
  0xd2   : > { %1790 = vmatmul.mubr.bf16.vlgmr.msra.gmra.mrb[0].mxu0 %v5633_v7  ;;  %1962 = vmatmul.mubr.bf16.vlgmr.msra.gmra.mrb[0].mxu1 %v5633_v7 }
  0xd3   : > { %1801 = vmatpush1.bf16.msra.mxu0 %v5636_v8  ;;  %1973 = vmatpush1.bf16.msra.mxu1 %v5639_v9 }
  0xd4   : > { %1832 = vmatprep.mubr.bf16.mxu0 %v6147_v11  ;;  %2004 = vmatprep.mubr.bf16.mxu1 %v6147_v11 }
  0xd5   : > { %5142 = vmatprep.subr.bf16.mxu1 %v5643_v10  ;;  %2531 = vmatprep.subr.bf16.mxu0 %v5677_v29  ;;  %v5719_v29 = vld [vmem:[%s7889_s8 + $0xac] ss:$28 sps:$4 sm:$0xff]  }
  0xde   : > { %4856 = vmatmul.mubr.msk.bf16.vlgmr.msra.gmra.mrb[0].mxu0 %vm1667_vm0, %v5642_v12  ;;  %4857 = vmatmul.mubr.msk.bf16.vlgmr.msra.gmra.mrb[0].mxu1 %vm1667_vm0, %v5642_v12  ;;  %v5660_v12 = vld [vmem:[%s7885_s4 + $0x80] sm:$0xff]  }
  0xdf   : > { %5143 = vmatpush3.bf16.msra.mxu1 %v5644_v13  ;;  %2563 = vmatprep.mubr.bf16.mxu0 %v6147_v11 }
  0xe0   : > { %5144 = vmatprep.subr.bf16.mxu1 %v5645_v14  ;;  %v5661_v14 = vld [vmem:[%s7885_s4 + $0xc8] sm:$0xff]  }
  0xe3   : > { %5145 = vmatpush3.bf16.msra.mxu1 %v5646_v15  ;;  %v5662_v15 = vld [vmem:[%s7885_s4 + $0x88] sm:$0xff]  }
  0xe4   : > { %5146 = vmatprep.subr.bf16.mxu1 %v5647_v16  ;;  %v5663_v16 = vld [vmem:[%s7885_s4 + $0xd0] sm:$0xff]  }
  0xe7   : > { %5147 = vmatpush3.bf16.msra.mxu1 %v5648_v17  ;;  %v5664_v17 = vld [vmem:[%s7885_s4 + $0x90] sm:$0xff]  }
  0xe8   : > { %5148 = vmatprep.subr.bf16.mxu1 %v5649_v18  ;;  %v5665_v18 = vld [vmem:[%s7885_s4 + $0xd8] sm:$0xff]  }
  0xeb   : > { %5149 = vmatpush3.bf16.msra.mxu1 %v5650_v19  ;;  %v5666_v19 = vld [vmem:[%s7885_s4 + $0x98] sm:$0xff]  }
  0xec   : > { %5150 = vmatprep.subr.bf16.mxu1 %v5651_v20  ;;  %v5667_v20 = vld [vmem:[%s7885_s4 + $0xe0] sm:$0xff]  }
  0xef   : > { %5151 = vmatpush3.bf16.msra.mxu1 %v5652_v21  ;;  %v5668_v21 = vld [vmem:[%s7885_s4 + $0xa0] sm:$0xff]  }
  0xf0   : > { %5152 = vmatprep.subr.bf16.mxu1 %v5653_v22  ;;  %v5669_v22 = vld [vmem:[%s7885_s4 + $0xe8] sm:$0xff]  }
  0xf3   : > { %5153 = vmatpush3.bf16.msra.mxu1 %v5654_v23  ;;  %v5670_v23 = vld [vmem:[%s7885_s4 + $0xa8] sm:$0xff]  }
  0xf4   : > { %5154 = vmatprep.subr.bf16.mxu1 %v5655_v24  ;;  %v5671_v24 = vld [vmem:[%s7885_s4 + $0xf0] sm:$0xff]  }
  0xf7   : > { %5155 = vmatpush3.bf16.msra.mxu1 %v5656_v25  ;;  %v5672_v25 = vld [vmem:[%s7885_s4 + $0xb0] sm:$0xff]  }
  0xf8   : > { %5156 = vmatprep.subr.bf16.mxu1 %v5657_v26  ;;  %v5673_v26 = vld [vmem:[%s7885_s4 + $0xf8] sm:$0xff]  }
  0xfb   : > { %5157 = vmatpush3.bf16.msra.mxu1 %v5658_v27  ;;  %v5674_v27 = vld [vmem:[%s7885_s4 + $0xb8] sm:$0xff]  }
  0xfc   : > { %5164 = vmatprep.subr.bf16.mxu1 %v5659_v28  ;;  %v5675_v28 = vld [vmem:[%s7887_s6] ss:$16 sps:$4 sm:$0xff]  }
  0xfd   : > { %2532 = vmatpush1.bf16.msra.mxu0 %v5675_v28  ;;  %v5714_v28 = vld [vmem:[%s7889_s8 + $0x78] ss:$28 sps:$4 sm:$0xff]  }
 0x1b1   : > { %v1834_v40 = vpop.f32.mrb[0].mxu0  ;;  %v2006_v41 = vpop.f32.mrb[0].mxu1 }
 0x1b2   : > { %v5230_v42 = vadd.f32 %v1834_v40, %v635_v36  ;;  %v5234_v43 = vadd.f32 %v2006_v41, %v643_v37  ;;  %v1836_v44 = vpop.f32.mrb[1].mxu0  ;;  %v2008_v45 = vpop.f32.mrb[1].mxu1 }
 0x1b3   : > { %v5231_v46 = vadd.f32 %v1836_v44, %v639_v38  ;;  %v5235_v47 = vadd.f32 %v2008_v45, %v647_v39  ;;  %v1838_v48 = vpop.f32.mrb[2].mxu0  ;;  %v2010_v49 = vpop.f32.mrb[2].mxu1 }
 0x1b4   : > { %vm2015_vm1 = vcmp.ge.f32.partialorder %v5230_v42, 0.0  ;;  %v2023_v50 = vmul.f32 0.2, %v5230_v42  ;;  %vm2017_vm2 = vcmp.ge.f32.partialorder %v5234_v43, 0.0  ;;  %v2025_v51 = vmul.f32 0.2, %v5234_v43 }
 0x1b5   : > { %vm2016_vm3 = vcmp.ge.f32.partialorder %v5231_v46, 0.0  ;;  %v2024_v52 = vmul.f32 0.2, %v5231_v46  ;;  %vm2018_vm4 = vcmp.ge.f32.partialorder %v5235_v47, 0.0  ;;  %v2026_v53 = vmul.f32 0.2, %v5235_v47 }
 0x1b6   : > { %v5232_v54 = vadd.f32 %v1838_v48, %v635_v36  ;;  %v5236_v55 = vadd.f32 %v2010_v49, %v643_v37  ;;  %v1840_v56 = vpop.f32.mrb[3].mxu0  ;;  %v2012_v57 = vpop.f32.mrb[3].mxu1  ;;  %v2031_v58 = vsel %vm2015_vm1, %v5230_v42, %v2023_v50  ;;  %v2033_v59 = vsel %vm2017_vm2, %v5234_v43, %v2025_v51  ;;  %v5680_v36 = vld [vmem:[%s7887_s6 + $0xc] ss:$16 sps:$4 sm:$0xff]  }
 0x1b7   : > { %v5233_v60 = vadd.f32 %v1840_v56, %v639_v38  ;;  %v5237_v61 = vadd.f32 %v2012_v57, %v647_v39  ;;  %v2032_v4 = vsel %vm2016_vm3, %v5231_v46, %v2024_v52  ;;  %v2034_v5 = vsel %vm2018_vm4, %v5235_v47, %v2026_v53  ;;  %v5686_v37 = vld [vmem:[%s7887_s6 + $0x2c] ss:$16 sps:$4 sm:$0xff]   ;;  %v5681_v38 = vld [vmem:[%s7887_s6 + $0x20] ss:$16 sps:$4 sm:$0xff]   ;;  %v5684_v39 = vld [vmem:[%s7887_s6 + $0x28] ss:$16 sps:$4 sm:$0xff]  }
 0x1b8   : > { %vm2019_vm5 = vcmp.ge.f32.partialorder %v5232_v54, 0.0  ;;  %v2027_v62 = vmul.f32 0.2, %v5232_v54  ;;  %vm2021_vm6 = vcmp.ge.f32.partialorder %v5236_v55, 0.0  ;;  %v2029_v63 = vmul.f32 0.2, %v5236_v55 }
 0x1b9   : > { %vm2020_vm7 = vcmp.ge.f32.partialorder %v5233_v60, 0.0  ;;  %v2028_v0 = vmul.f32 0.2, %v5233_v60  ;;  %vm2022_vm8 = vcmp.ge.f32.partialorder %v5237_v61, 0.0  ;;  %v2030_v1 = vmul.f32 0.2, %v5237_v61 }
 0x1ba   : > { %v2035_v2 = vsel %vm2019_vm5, %v5232_v54, %v2027_v62  ;;  %v2037_v3 = vsel %vm2021_vm6, %v5236_v55, %v2029_v63  ;;  %v4858_v46 = vld [vmem:[%s7886_s5] ss:$0 sm:$0xff]  ;;  %v5690_v62 = vld [vmem:[%s7887_s6 + $0x48] ss:$16 sps:$4 sm:$0xff]   ;;  %v5692_v63 = vld [vmem:[%s7887_s6 + $0x4c] ss:$16 sps:$4 sm:$0xff]  }
 0x1bb   : > { %v2039_v6 = vpack.c.bf16 %v2035_v2, %v2031_v58  ;;  %v2041_v7 = vpack.c.bf16 %v2037_v3, %v2033_v59  ;;  %v2036_v8 = vsel %vm2020_vm7, %v5233_v60, %v2028_v0  ;;  %v2038_v9 = vsel %vm2022_vm8, %v5237_v61, %v2030_v1  ;;  %v5689_v60 = vld [vmem:[%s7887_s6 + $0x44] ss:$16 sps:$4 sm:$0xff]   ;;  %v5687_v61 = vld [vmem:[%s7887_s6 + $0x40] ss:$16 sps:$4 sm:$0xff]   ;;  %v5698_v2 = vld [vmem:[%s7887_s6 + $0x6c] ss:$16 sps:$4 sm:$0xff]  }
 0x1bc   : > { %v2040_v10 = vpack.c.bf16 %v2036_v8, %v2032_v4  ;;  %v2042_v13 = vpack.c.bf16 %v2038_v9, %v2034_v5  ;;  %v5695_v1 = vld [vmem:[%s7887_s6 + $0x64] ss:$16 sps:$4 sm:$0xff]   ;;  %v5693_v3 = vld [vmem:[%s7887_s6 + $0x60] ss:$16 sps:$4 sm:$0xff]   ;;  %v5696_v4 = vld [vmem:[%s7887_s6 + $0x68] ss:$16 sps:$4 sm:$0xff]  }
 0x1bd   : > { %v5701_v5 = vld [vmem:[%s7889_s8 + $0x4] ss:$28 sps:$4 sm:$0xff]  }
 0x1be   : > { %2338 = vmatprep.mubr.bf16.mxu1 %v2040_v10  ;;  %v2394_v9 = vld [vmem:[%s421_s15] sm:$0xff] }
 0x1bf   : > { %2339 = vmatmul.mubr.bf16.vlgmr.msra.gmra.mrb[4].mxu1 %v2039_v6  ;;  %v5704_v6 = vld [vmem:[%s7889_s8 + $0xc] ss:$28 sps:$4 sm:$0xff]  }
 0x1c0   : > { %5165 = vmatpush3.bf16.msra.mxu1 %v5660_v12  ;;  %2379 = vmatprep.mubr.bf16.mxu1 %v2042_v13  ;;  %v2395_v12 = vld [vmem:[%s421_s15 + $0x8] sm:$0xff]  ;;  %s4538_s15 = sshll.u32 %s7023_s26, 4  ;;  %s7790_s15 = int_to_ptr.vmem [resolvable:$true] %s4538_s15 }
 0x1c1   : > { %5166 = vmatprep.subr.bf16.mxu1 %v5661_v14  ;;  %s6051_s29 = scalar_lea.vmem %s7790_s15, 256 }
 0x1c2   : > { %p6052_p11 = scmp.ne.s32.totalorder %s7790_s15, %s6051_s29 }
 0x1c4   : > { %5167 = vmatpush3.bf16.msra.mxu1 %v5662_v15  ;;  %p6053_p12 = pnand %p6052_p11, %p6253_p5 }
 0x1c5   : > { %5168 = vmatprep.subr.bf16.mxu1 %v5663_v16 }
 0x1c6   : > { %p6054_p13 = pneg %p6053_p12 }
 0x1c8   : > { %5169 = vmatpush3.bf16.msra.mxu1 %v5664_v17 }
 0x1c9   : > { %5170 = vmatprep.subr.bf16.mxu1 %v5665_v18  ;;  %v5699_v18 = vld [vmem:[%s7889_s8] ss:$28 sps:$4 sm:$0xff]  }
 0x1cc   : > { %5171 = vmatpush3.bf16.msra.mxu1 %v5666_v19  ;;  %v5702_v19 = vld [vmem:[%s7889_s8 + $0x8] ss:$28 sps:$4 sm:$0xff]  }
 0x1cd   : > { %5172 = vmatprep.subr.bf16.mxu1 %v5667_v20 }
 0x1d0   : > { %5173 = vmatpush3.bf16.msra.mxu1 %v5668_v21  ;;  %v5707_v21 = vld [vmem:[%s7889_s8 + $0x3c] ss:$28 sps:$4 sm:$0xff]  }
 0x1d1   : > { %5174 = vmatprep.subr.bf16.mxu1 %v5669_v22  ;;  %v5710_v22 = vld [vmem:[%s7889_s8 + $0x44] ss:$28 sps:$4 sm:$0xff]  }
 0x1d4   : > { %5175 = vmatpush3.bf16.msra.mxu1 %v5670_v23  ;;  %v5705_v23 = vld [vmem:[%s7889_s8 + $0x38] ss:$28 sps:$4 sm:$0xff]  }
 0x1d5   : > { %5176 = vmatprep.subr.bf16.mxu1 %v5671_v24  ;;  %v5708_v24 = vld [vmem:[%s7889_s8 + $0x40] ss:$28 sps:$4 sm:$0xff]  }
 0x1d8   : > { %5177 = vmatpush3.bf16.msra.mxu1 %v5672_v25  ;;  %v5713_v25 = vld [vmem:[%s7889_s8 + $0x74] ss:$28 sps:$4 sm:$0xff]  }
 0x1d9   : > { %5178 = vmatprep.subr.bf16.mxu1 %v5673_v26  ;;  %v5716_v26 = vld [vmem:[%s7889_s8 + $0x7c] ss:$28 sps:$4 sm:$0xff]  }
 0x1dc   : > { %5179 = vmatpush3.bf16.msra.mxu1 %v5674_v27  ;;  %v5711_v27 = vld [vmem:[%s7889_s8 + $0x70] ss:$28 sps:$4 sm:$0xff]  }
 0x1dd   : > { %2574 = vmatprep.subr.bf16.mxu1 %v5680_v36  ;;  %v5717_v36 = vld [vmem:[%s7889_s8 + $0xa8] ss:$28 sps:$4 sm:$0xff]  }
 0x1df   : > { %2380 = vmatmul.mubr.bf16.vlgmr.msra.gmra.mrb[8].mxu1 %v2041_v7 }
 0x1e0   : > { %2606 = vmatprep.mubr.bf16.mxu1 %v6147_v11  ;;  %v5683_v11 = vld [vmem:[%s7887_s6 + $0x24] ss:$16 sps:$4 sm:$0xff]   ;;  %2575 = vmatpush1.bf16.msra.mxu1 %v5678_v33 }
 0x1e1   : > { %2533 = vmatprep.subr.bf16.mxu0 %v5683_v11  ;;  %2576 = vmatprep.subr.bf16.mxu1 %v5686_v37  ;;  %v5722_v33 = vld [vmem:[%s7889_s8 + $0xb4] ss:$28 sps:$4 sm:$0xff]   ;;  %v5725_v37 = vld [vmem:[%s7889_s8 + $0xe4] ss:$28 sps:$4 sm:$0xff]  }
 0x1e2   : > { %2534 = vmatpush1.bf16.msra.mxu0 %v5681_v38  ;;  %v5720_v11 = vld [vmem:[%s7889_s8 + $0xb0] ss:$28 sps:$4 sm:$0xff]  }
 0x1e3   : > { %2535 = vmatprep.subr.bf16.mxu0 %v5689_v60  ;;  %v5728_v38 = vld [vmem:[%s7889_s8 + $0xec] ss:$28 sps:$4 sm:$0xff]   ;;  %v5756_v60 = vld [vmem:[%s7889_s8 + $0x200] ss:$28 sps:$4 sm:$0xff]  }
 0x1e4   : > { %2577 = vmatpush1.bf16.msra.mxu1 %v5684_v39  ;;  %v5723_v39 = vld [vmem:[%s7889_s8 + $0xe0] ss:$28 sps:$4 sm:$0xff]  }
 0x1e5   : > { %2578 = vmatprep.subr.bf16.mxu1 %v5692_v63  ;;  %v5759_v63 = vld [vmem:[%s7889_s8 + $0x230] ss:$28 sps:$4 sm:$0xff]  }
 0x1e6   : > { %2536 = vmatpush1.bf16.msra.mxu0 %v5687_v61  ;;  %v5761_v61 = vld [vmem:[%s7889_s8 + $0x234] ss:$28 sps:$4 sm:$0xff]  }
 0x1e7   : > { %2537 = vmatprep.subr.bf16.mxu0 %v5695_v1  ;;  %v5767_v1 = vld [vmem:[%s7889_s8 + $0x26c] ss:$28 sps:$4 sm:$0xff]  }
 0x1e8   : > { %2579 = vmatpush1.bf16.msra.mxu1 %v5690_v62  ;;  %v5764_v62 = vld [vmem:[%s7889_s8 + $0x23c] ss:$28 sps:$4 sm:$0xff]  }
 0x1e9   : > { %2580 = vmatprep.subr.bf16.mxu1 %v5698_v2  ;;  %v5770_v2 = vld [vmem:[%s7889_s8 + $0x274] ss:$28 sps:$4 sm:$0xff]  }
 0x1ea   : > { %2538 = vmatpush1.bf16.msra.mxu0 %v5693_v3  ;;  %v5765_v3 = vld [vmem:[%s7889_s8 + $0x268] ss:$28 sps:$4 sm:$0xff]  }
 0x1eb   : > { %4090 = vmatprep.subr.bf16.mxu0 %v5701_v5  ;;  %v5773_v5 = vld [vmem:[%s7889_s8 + $0x2a4] ss:$28 sps:$4 sm:$0xff]  }
 0x1ec   : > { %2581 = vmatpush1.bf16.msra.mxu1 %v5696_v4  ;;  %v5768_v4 = vld [vmem:[%s7889_s8 + $0x270] ss:$28 sps:$4 sm:$0xff]  }
 0x1ed   : > { %4176 = vmatprep.subr.bf16.mxu1 %v5704_v6  ;;  %v5776_v6 = vld [vmem:[%s7889_s8 + $0x2ac] ss:$28 sps:$4 sm:$0xff]  }
 0x292   : > { %v5158_v40 = vpop.f32.mrb[4].mxu1 }
 0x293   : > { %v5159_v41 = vpop.f32.mrb[5].mxu1 }
 0x294   : > { %v5160_v42 = vadd.f32 %v5159_v41, %v5158_v40  ;;  %v5161_v43 = vpop.f32.mrb[6].mxu1  ;;  %v5726_v40 = vld [vmem:[%s7889_s8 + $0xe8] ss:$28 sps:$4 sm:$0xff]   ;;  %v5731_v41 = vld [vmem:[%s7889_s8 + $0x11c] ss:$28 sps:$4 sm:$0xff]  }
 0x295   : > { %v5162_v44 = vpop.f32.mrb[7].mxu1 }
 0x296   : > { %v5163_v45 = vadd.f32 %v5162_v44, %v5161_v43  ;;  %v2341_v49 = vadd.f32 %v5160_v42, %v4858_v46  ;;  %v5734_v42 = vld [vmem:[%s7889_s8 + $0x124] ss:$28 sps:$4 sm:$0xff]   ;;  %v5729_v43 = vld [vmem:[%s7889_s8 + $0x118] ss:$28 sps:$4 sm:$0xff]  }
 0x297   : > { %v5732_v44 = vld [vmem:[%s7889_s8 + $0x120] ss:$28 sps:$4 sm:$0xff]  }
 0x298   : > { %v2344_v53 = vadd.f32 %v5163_v45, %v4858_v46  ;;  %v5737_v45 = vld [vmem:[%s7889_s8 + $0x154] ss:$28 sps:$4 sm:$0xff]   ;;  %v5740_v46 = vld [vmem:[%s7889_s8 + $0x15c] ss:$28 sps:$4 sm:$0xff]  }
 0x2b2   : > { %v5180_v47 = vpop.f32.mrb[8].mxu1 }
 0x2b3   : > { %v5181_v48 = vpop.f32.mrb[9].mxu1 }
 0x2b4   : > { %v5182_v50 = vadd.f32 %v5181_v48, %v5180_v47  ;;  %v5183_v51 = vpop.f32.mrb[10].mxu1  ;;  %v5735_v47 = vld [vmem:[%s7889_s8 + $0x150] ss:$28 sps:$4 sm:$0xff]   ;;  %v5738_v48 = vld [vmem:[%s7889_s8 + $0x158] ss:$28 sps:$4 sm:$0xff]  }
 0x2b5   : > { %v5184_v52 = vpop.f32.mrb[11].mxu1 }
 0x2b6   : > { %v2382_v54 = vadd.f32 %v5182_v50, %v2341_v49  ;;  %v5185_v55 = vadd.f32 %v5184_v52, %v5183_v51  ;;  %v5743_v49 = vld [vmem:[%s7889_s8 + $0x18c] ss:$28 sps:$4 sm:$0xff]   ;;  %v5746_v50 = vld [vmem:[%s7889_s8 + $0x194] ss:$28 sps:$4 sm:$0xff]  }
 0x2b7   : > { %v5741_v51 = vld [vmem:[%s7889_s8 + $0x188] ss:$28 sps:$4 sm:$0xff]   ;;  %v5744_v52 = vld [vmem:[%s7889_s8 + $0x190] ss:$28 sps:$4 sm:$0xff]  }
 0x2b8   : > { %v2388_v56 = vmul.f32 0.5, %v2382_v54  ;;  %4500 = vst [vmem:[%s7023_s26] sm:$0xff] %v2382_v54  ;;  %v2385_v57 = vadd.f32 %v5185_v55, %v2344_v53  ;;  %v5749_v53 = vld [vmem:[%s7889_s8 + $0x1c4] ss:$28 sps:$4 sm:$0xff]  }
 0x2b9   : > { %v5747_v55 = vld [vmem:[%s7889_s8 + $0x1c0] ss:$28 sps:$4 sm:$0xff]  }
 0x2ba   : > { %v2390_v58 = vmul.f32 1.442695, %v2388_v56  ;;  %v2389_v59 = vmul.f32 0.5, %v2385_v57  ;;  %4501 = vst [vmem:[%s7023_s26 + $0x8] sm:$0xff] %v2385_v57  ;;  %v5750_v56 = vld [vmem:[%s7889_s8 + $0x1c8] ss:$28 sps:$4 sm:$0xff]  }
 0x2bb   : > { %s4508_s26 = scalar_lea.sflag [#allocation5], %s7017_s23 }
 0x2bc   : > { %6019 = vpow2.f32 %v2390_v58  ;;  %v2392_v0 = vmul.f32 1.442695, %v2389_v59  ;;  %v5758_v58 = vld [vmem:[%s7889_s8 + $0x204] ss:$28 sps:$4 sm:$0xff]   ;;  %v5753_v59 = vld [vmem:[%s7889_s8 + $0x1f8] ss:$28 sps:$4 sm:$0xff]  }
 0x2be   : > { %6021 = vpow2.f32 %v2392_v0  ;;  %v5762_v0 = vld [vmem:[%s7889_s8 + $0x238] ss:$28 sps:$4 sm:$0xff]  }
 0x2c6   : > { %v6020_v7 = vpop.eup %6019 }
 0x2c7   : > { %2398 = vrot.lane.b32.xlu0 %v6020_v7, %s6148_s25  ;;  %v5771_v7 = vld [vmem:[%s7889_s8 + $0x2a0] ss:$28 sps:$4 sm:$0xff]  }
 0x2c8   : > { %v6022_v8 = vpop.eup %6021 }
 0x2cb   : > { %2400 = vrot.lane.b32.xlu0 %v6022_v8, %s6148_s25  ;;  %v5774_v8 = vld [vmem:[%s7889_s8 + $0x2a8] ss:$28 sps:$4 sm:$0xff]   ;;  %s6055_s25 = sshll.u32 %s6149_s13, 4  ;;  %s6056_s25 = int_to_ptr.vmem [resolvable:$false] %s6055_s25 }
 0x2cc   : > { %s6057_s30 = scalar_lea.vmem %s6056_s25, 512  ;;  %p6058_p0 = scmp.lt.s32.totalorder %s7790_s15, %s6056_s25 }
 0x2cd   : > { %p6059_p1 = scmp.lt.s32.totalorder %s6057_s30, %s6051_s29 }
 0x2cf   : > { %p6060_p2 = por %p6059_p1, %p6058_p0 }
 0x2d1   : > { %p6061_p3 = pnand %p6060_p2, %p6054_p13 }
 0x339   : > { %v2399_v10 = vpop.permute.xlu0 %2398 }
 0x33a   : > { %v2404_v13 = vmul.f32 %v2399_v10, %v2394_v9  ;;  %v5779_v9 = vld [vmem:[%s7889_s8 + $0x2dc] ss:$28 sps:$4 sm:$0xff]   ;;  %v5782_v10 = vld [vmem:[%s7889_s8 + $0x2e4] ss:$28 sps:$4 sm:$0xff]  }
 0x33c   : > { %v2406_v16 = vadd.f32 %v2404_v13, %v2382_v54  ;;  %v5752_v54 = vld [vmem:[%s7889_s8 + $0x1cc] ss:$28 sps:$4 sm:$0xff]   ;;  %v5780_v13 = vld [vmem:[%s7889_s8 + $0x2e0] ss:$28 sps:$4 sm:$0xff]  }
 0x33d   : > { %v2401_v14 = vpop.permute.xlu0 %2400 }
 0x33e   : > { %v2405_v15 = vmul.f32 %v2401_v14, %v2395_v12  ;;  %v5777_v12 = vld [vmem:[%s7889_s8 + $0x2d8] ss:$28 sps:$4 sm:$0xff]  }
 0x33f   : > { %v5785_v14 = vld [vmem:[%s7889_s8 + $0x314] ss:$28 sps:$4 sm:$0xff]  }
 0x340   : > { %v2407_v17 = vadd.f32 %v2405_v15, %v2385_v57  ;;  %v5755_v57 = vld [vmem:[%s7889_s8 + $0x1fc] ss:$28 sps:$4 sm:$0xff]  }
 0x341   : > { %v5788_v15 = vld [vmem:[%s7889_s8 + $0x31c] ss:$28 sps:$4 sm:$0xff]  }
 0x342   : > { %v2408_v20 = vpack.c.bf16 %v2407_v17, %v2406_v16  ;;  %v5783_v16 = vld [vmem:[%s7889_s8 + $0x310] ss:$28 sps:$4 sm:$0xff]   ;;  %v5786_v17 = vld [vmem:[%s7889_s8 + $0x318] ss:$28 sps:$4 sm:$0xff]  }
 0x344   : > { %4907 = vmatmul.mubr.msk.bf16.vlgmr.msra.gmra.mrb[4].mxu0 %vm2527_vm9, %v2408_v20  ;;  %4908 = vmatmul.mubr.msk.bf16.vlgmr.msra.gmra.mrb[12].mxu1 %vm2527_vm9, %v2408_v20  ;;  %v5789_v20 = vld [vmem:[%s7889_s8 + $0x348] ss:$28 sps:$4 sm:$0xff]  }
 0x345   : > { %4091 = vmatpush1.bf16.msra.mxu0 %v5699_v18  ;;  %4177 = vmatpush1.bf16.msra.mxu1 %v5702_v19  ;;  %v5791_v18 = vld [vmem:[%s7889_s8 + $0x34c] ss:$28 sps:$4 sm:$0xff]   ;;  %v5794_v19 = vld [vmem:[%s7889_s8 + $0x354] ss:$28 sps:$4 sm:$0xff]  }
 0x346   : > { %4092 = vmatprep.subr.bf16.mxu0 %v5707_v21  ;;  %4178 = vmatprep.subr.bf16.mxu1 %v5710_v22  ;;  %v5792_v21 = vld [vmem:[%s7889_s8 + $0x350] ss:$28 sps:$4 sm:$0xff]   ;;  %v5797_v22 = vld [vmem:[%s7889_s8 + $0x384] ss:$28 sps:$4 sm:$0xff]  }
 0x349   : > { %4093 = vmatpush1.bf16.msra.mxu0 %v5705_v23  ;;  %4179 = vmatpush1.bf16.msra.mxu1 %v5708_v24  ;;  %v5800_v23 = vld [vmem:[%s7889_s8 + $0x38c] ss:$28 sps:$4 sm:$0xff]   ;;  %v2425_v24 = vld [vmem:[%s7888_s7] sm:$0xf] }
 0x34a   : > { %4094 = vmatprep.subr.bf16.mxu0 %v5713_v25  ;;  %4180 = vmatprep.subr.bf16.mxu1 %v5716_v26  ;;  %v2430_v25 = vrot.slane %v2425_v24, %v6926_v31  ;;  %v2438_v26 = vrot.slane %v2425_v24, %v6929_v32 }
 0x34d   : > { %4095 = vmatpush1.bf16.msra.mxu0 %v5711_v27  ;;  %4181 = vmatpush1.bf16.msra.mxu1 %v5714_v28  ;;  %v2434_v27 = vrot.slane %v2425_v24, %v6935_v34  ;;  %v2442_v28 = vrot.slane %v2425_v24, %v6938_v35  ;;  %v5827_v24 = vld [vmem:[%s7889_s8 + $0x49c] ss:$28 sps:$4 sm:$0xff]  }
 0x34e   : > { %4096 = vmatprep.subr.bf16.mxu0 %v5719_v29  ;;  %4182 = vmatprep.subr.bf16.mxu1 %v5722_v33 }
 0x351   : > { %4097 = vmatpush1.bf16.msra.mxu0 %v5717_v36  ;;  %4183 = vmatpush1.bf16.msra.mxu1 %v5720_v11 }
 0x352   : > { %4098 = vmatprep.subr.bf16.mxu0 %v5725_v37  ;;  %4184 = vmatprep.subr.bf16.mxu1 %v5728_v38 }
 0x355   : > { %4099 = vmatpush1.bf16.msra.mxu0 %v5723_v39  ;;  %4185 = vmatpush1.bf16.msra.mxu1 %v5726_v40 }
 0x356   : > { %4100 = vmatprep.subr.bf16.mxu0 %v5731_v41  ;;  %4186 = vmatprep.subr.bf16.mxu1 %v5734_v42 }
 0x359   : > { %4101 = vmatpush1.bf16.msra.mxu0 %v5729_v43  ;;  %4187 = vmatpush1.bf16.msra.mxu1 %v5732_v44 }
 0x35a   : > { %4102 = vmatprep.subr.bf16.mxu0 %v5737_v45  ;;  %4188 = vmatprep.subr.bf16.mxu1 %v5740_v46 }
 0x35d   : > { %4103 = vmatpush1.bf16.msra.mxu0 %v5735_v47  ;;  %4189 = vmatpush1.bf16.msra.mxu1 %v5738_v48 }
 0x35e   : > { %4104 = vmatprep.subr.bf16.mxu0 %v5743_v49  ;;  %4190 = vmatprep.subr.bf16.mxu1 %v5746_v50 }
 0x361   : > { %4105 = vmatpush1.bf16.msra.mxu0 %v5741_v51  ;;  %4191 = vmatpush1.bf16.msra.mxu1 %v5744_v52 }
 0x362   : > { %4106 = vmatprep.subr.bf16.mxu0 %v5749_v53  ;;  %4192 = vmatprep.subr.bf16.mxu1 %v5752_v54 }
 0x365   : > { %4107 = vmatpush1.bf16.msra.mxu0 %v5747_v55  ;;  %4193 = vmatpush1.bf16.msra.mxu1 %v5750_v56 }
 0x366   : > { %4108 = vmatprep.subr.bf16.mxu0 %v5755_v57  ;;  %4194 = vmatprep.subr.bf16.mxu1 %v5758_v58 }
 0x369   : > { %4109 = vmatpush1.bf16.msra.mxu0 %v5753_v59  ;;  %4195 = vmatpush1.bf16.msra.mxu1 %v5756_v60 }
 0x36a   : > { %4110 = vmatprep.subr.bf16.mxu0 %v5761_v61  ;;  %4196 = vmatprep.subr.bf16.mxu1 %v5764_v62 }
 0x36d   : > { %4111 = vmatpush1.bf16.msra.mxu0 %v5759_v63  ;;  %4197 = vmatpush1.bf16.msra.mxu1 %v5762_v0 }
 0x36e   : > { %4112 = vmatprep.subr.bf16.mxu0 %v5767_v1  ;;  %4198 = vmatprep.subr.bf16.mxu1 %v5770_v2 }
 0x371   : > { %4113 = vmatpush1.bf16.msra.mxu0 %v5765_v3  ;;  %4199 = vmatpush1.bf16.msra.mxu1 %v5768_v4 }
 0x372   : > { %4114 = vmatprep.subr.bf16.mxu0 %v5773_v5  ;;  %4200 = vmatprep.subr.bf16.mxu1 %v5776_v6  ;;  %v5795_v5 = vld [vmem:[%s7889_s8 + $0x380] ss:$28 sps:$4 sm:$0xff]   ;;  %v5798_v6 = vld [vmem:[%s7889_s8 + $0x388] ss:$28 sps:$4 sm:$0xff]  }
 0x375   : > { %4115 = vmatpush1.bf16.msra.mxu0 %v5771_v7  ;;  %4201 = vmatpush1.bf16.msra.mxu1 %v5774_v8  ;;  %v5803_v7 = vld [vmem:[%s7889_s8 + $0x3bc] ss:$28 sps:$4 sm:$0xff]   ;;  %v5806_v8 = vld [vmem:[%s7889_s8 + $0x3c4] ss:$28 sps:$4 sm:$0xff]  }
 0x376   : > { %4116 = vmatprep.subr.bf16.mxu0 %v5779_v9  ;;  %4202 = vmatprep.subr.bf16.mxu1 %v5782_v10  ;;  %v5801_v9 = vld [vmem:[%s7889_s8 + $0x3b8] ss:$28 sps:$4 sm:$0xff]   ;;  %v5804_v10 = vld [vmem:[%s7889_s8 + $0x3c0] ss:$28 sps:$4 sm:$0xff]  }
 0x379   : > { %4117 = vmatpush1.bf16.msra.mxu0 %v5777_v12  ;;  %4203 = vmatpush1.bf16.msra.mxu1 %v5780_v13  ;;  %v5809_v12 = vld [vmem:[%s7889_s8 + $0x3f4] ss:$28 sps:$4 sm:$0xff]   ;;  %v5812_v13 = vld [vmem:[%s7889_s8 + $0x3fc] ss:$28 sps:$4 sm:$0xff]  }
 0x37a   : > { %4118 = vmatprep.subr.bf16.mxu0 %v5785_v14  ;;  %4204 = vmatprep.subr.bf16.mxu1 %v5788_v15  ;;  %v5807_v14 = vld [vmem:[%s7889_s8 + $0x3f0] ss:$28 sps:$4 sm:$0xff]   ;;  %v5810_v15 = vld [vmem:[%s7889_s8 + $0x3f8] ss:$28 sps:$4 sm:$0xff]  }
 0x37d   : > { %4119 = vmatpush1.bf16.msra.mxu0 %v5783_v16  ;;  %4205 = vmatpush1.bf16.msra.mxu1 %v5786_v17  ;;  %v5815_v16 = vld [vmem:[%s7889_s8 + $0x42c] ss:$28 sps:$4 sm:$0xff]   ;;  %v5818_v17 = vld [vmem:[%s7889_s8 + $0x434] ss:$28 sps:$4 sm:$0xff]  }
 0x37e   : > { %4120 = vmatprep.subr.bf16.mxu0 %v5791_v18  ;;  %4206 = vmatprep.subr.bf16.mxu1 %v5794_v19  ;;  %v5813_v18 = vld [vmem:[%s7889_s8 + $0x428] ss:$28 sps:$4 sm:$0xff]   ;;  %v5816_v19 = vld [vmem:[%s7889_s8 + $0x430] ss:$28 sps:$4 sm:$0xff]  }
 0x381   : > { %4121 = vmatpush1.bf16.msra.mxu0 %v5789_v20  ;;  %4207 = vmatpush1.bf16.msra.mxu1 %v5792_v21  ;;  %v5821_v20 = vld [vmem:[%s7889_s8 + $0x464] ss:$28 sps:$4 sm:$0xff]   ;;  %v5824_v21 = vld [vmem:[%s7889_s8 + $0x46c] ss:$28 sps:$4 sm:$0xff]  }
 0x382   : > { %4133 = vmatprep.subr.bf16.mxu0 %v5797_v22  ;;  %4219 = vmatprep.subr.bf16.mxu1 %v5800_v23  ;;  %v5819_v22 = vld [vmem:[%s7889_s8 + $0x460] ss:$28 sps:$4 sm:$0xff]   ;;  %v5822_v23 = vld [vmem:[%s7889_s8 + $0x468] ss:$28 sps:$4 sm:$0xff]  }
 0x417   : > { %v2565_v29 = vpop.f32.mrb[4].mxu0  ;;  %v2608_v33 = vpop.f32.mrb[12].mxu1 }
 0x418   : > { %v2566_v36 = vadd.f32 %v2565_v29, %v2430_v25  ;;  %v2609_v11 = vadd.f32 %v2608_v33, %v2438_v26  ;;  %v2567_v37 = vpop.f32.mrb[5].mxu0  ;;  %v2610_v38 = vpop.f32.mrb[13].mxu1  ;;  %v5836_v29 = vld [vmem:[%s7889_s8 + $0x4dc] ss:$28 sps:$4 sm:$0xff]   ;;  %v5831_v33 = vld [vmem:[%s7889_s8 + $0x4d0] ss:$28 sps:$4 sm:$0xff]  }
 0x419   : > { %v2568_v39 = vadd.f32 %v2567_v37, %v2434_v27  ;;  %v2611_v40 = vadd.f32 %v2610_v38, %v2442_v28  ;;  %v2569_v41 = vpop.f32.mrb[6].mxu0  ;;  %v2612_v42 = vpop.f32.mrb[14].mxu1  ;;  %v5842_v37 = vld [vmem:[%s7889_s8 + $0x514] ss:$28 sps:$4 sm:$0xff]   ;;  %v5837_v38 = vld [vmem:[%s7889_s8 + $0x508] ss:$28 sps:$4 sm:$0xff]  }
 0x41a   : > { %vm2617_vm10 = vcmp.ge.f32.partialorder %v2566_v36, 0.0  ;;  %v2625_v43 = vmul.f32 0.2, %v2566_v36  ;;  %vm2619_vm11 = vcmp.ge.f32.partialorder %v2609_v11, 0.0  ;;  %v2627_v44 = vmul.f32 0.2, %v2609_v11 }
 0x41b   : > { %vm2618_vm12 = vcmp.ge.f32.partialorder %v2568_v39, 0.0  ;;  %v2626_v45 = vmul.f32 0.2, %v2568_v39  ;;  %vm2620_vm13 = vcmp.ge.f32.partialorder %v2611_v40, 0.0  ;;  %v2628_v46 = vmul.f32 0.2, %v2611_v40 }
 0x41c   : > { %v2570_v47 = vadd.f32 %v2569_v41, %v2430_v25  ;;  %v2613_v48 = vadd.f32 %v2612_v42, %v2438_v26  ;;  %v2571_v49 = vpop.f32.mrb[7].mxu0  ;;  %v2614_v50 = vpop.f32.mrb[15].mxu1  ;;  %v2633_v51 = vsel %vm2617_vm10, %v2566_v36, %v2625_v43  ;;  %v2635_v52 = vsel %vm2619_vm11, %v2609_v11, %v2627_v44  ;;  %v5830_v25 = vld [vmem:[%s7889_s8 + $0x4a4] ss:$28 sps:$4 sm:$0xff]   ;;  %v5825_v26 = vld [vmem:[%s7889_s8 + $0x498] ss:$28 sps:$4 sm:$0xff]  }
 0x41d   : > { %v2572_v53 = vadd.f32 %v2571_v49, %v2434_v27  ;;  %v2615_v54 = vadd.f32 %v2614_v50, %v2442_v28  ;;  %v2634_v59 = vsel %vm2618_vm12, %v2568_v39, %v2626_v45  ;;  %v2636_v60 = vsel %vm2620_vm13, %v2611_v40, %v2628_v46  ;;  %v5828_v27 = vld [vmem:[%s7889_s8 + $0x4a0] ss:$28 sps:$4 sm:$0xff]   ;;  %v5833_v28 = vld [vmem:[%s7889_s8 + $0x4d4] ss:$28 sps:$4 sm:$0xff]   ;;  %v5839_v11 = vld [vmem:[%s7889_s8 + $0x50c] ss:$28 sps:$4 sm:$0xff]  }
 0x41e   : > { %vm2621_vm14 = vcmp.ge.f32.partialorder %v2570_v47, 0.0  ;;  %v2629_v55 = vmul.f32 0.2, %v2570_v47  ;;  %vm2623_vm15 = vcmp.ge.f32.partialorder %v2613_v48, 0.0  ;;  %v2631_v56 = vmul.f32 0.2, %v2613_v48 }
 0x41f   : > { %vm2622_vm1 = vcmp.ge.f32.partialorder %v2572_v53, 0.0  ;;  %v2630_v57 = vmul.f32 0.2, %v2572_v53  ;;  %vm2624_vm2 = vcmp.ge.f32.partialorder %v2615_v54, 0.0  ;;  %v2632_v58 = vmul.f32 0.2, %v2615_v54 }
 0x420   : > { %v2637_v61 = vsel %vm2621_vm14, %v2570_v47, %v2629_v55  ;;  %v2639_v62 = vsel %vm2623_vm15, %v2613_v48, %v2631_v56  ;;  %v5834_v36 = vld [vmem:[%s7889_s8 + $0x4d8] ss:$28 sps:$4 sm:$0xff]   ;;  %v5840_v39 = vld [vmem:[%s7889_s8 + $0x510] ss:$28 sps:$4 sm:$0xff]   ;;  %v5845_v40 = vld [vmem:[%s7889_s8 + $0x544] ss:$28 sps:$4 sm:$0xff]  }
 0x421   : > { %v7262_v63 = vpack.c.bf16 %v2637_v61, %v2633_v51  ;;  %v7264_v0 = vpack.c.bf16 %v2639_v62, %v2635_v52  ;;  %v2638_v1 = vsel %vm2622_vm1, %v2572_v53, %v2630_v57  ;;  %v2640_v2 = vsel %vm2624_vm2, %v2615_v54, %v2632_v58  ;;  %v5848_v41 = vld [vmem:[%s7889_s8 + $0x54c] ss:$28 sps:$4 sm:$0xff]   ;;  %v5843_v42 = vld [vmem:[%s7889_s8 + $0x540] ss:$28 sps:$4 sm:$0xff]   ;;  %v5849_v46 = vld [vmem:[%s7889_s8 + $0x578] ss:$28 sps:$4 sm:$0xff]  }
 0x422   : > { %v7266_v3 = vpack.c.bf16 %v2638_v1, %v2634_v59  ;;  %v7268_v4 = vpack.c.bf16 %v2640_v2, %v2636_v60  ;;  %v5846_v43 = vld [vmem:[%s7889_s8 + $0x548] ss:$28 sps:$4 sm:$0xff]   ;;  %v5851_v44 = vld [vmem:[%s7889_s8 + $0x57c] ss:$28 sps:$4 sm:$0xff]   ;;  %v5857_v48 = vld [vmem:[%s7889_s8 + $0x5b4] ss:$28 sps:$4 sm:$0xff]  }
 0x423   : > { %v5854_v45 = vld [vmem:[%s7889_s8 + $0x584] ss:$28 sps:$4 sm:$0xff]   ;;  %v5860_v49 = vld [vmem:[%s7889_s8 + $0x5bc] ss:$28 sps:$4 sm:$0xff]   ;;  %v5855_v50 = vld [vmem:[%s7889_s8 + $0x5b0] ss:$28 sps:$4 sm:$0xff]  }
 0x424   : > { %4122 = vmatprep.mubr.bf16.mxu0 %v7266_v3  ;;  %4208 = vmatprep.mubr.bf16.mxu1 %v7266_v3  ;;  %v5852_v47 = vld [vmem:[%s7889_s8 + $0x580] ss:$28 sps:$4 sm:$0xff]   ;;  %v5858_v51 = vld [vmem:[%s7889_s8 + $0x5b8] ss:$28 sps:$4 sm:$0xff]   ;;  %v5863_v52 = vld [vmem:[%s7889_s8 + $0x5ec] ss:$28 sps:$4 sm:$0xff]  }
 0x425   : > { %4123 = vmatmul.mubr.bf16.vlgmr.msra.gmra.mrb[8].mxu0 %v7262_v63  ;;  %4209 = vmatmul.mubr.bf16.vlgmr.msra.gmra.mrb[16].mxu1 %v7262_v63  ;;  %v5866_v53 = vld [vmem:[%s7889_s8 + $0x5f4] ss:$28 sps:$4 sm:$0xff]   ;;  %v5861_v54 = vld [vmem:[%s7889_s8 + $0x5e8] ss:$28 sps:$4 sm:$0xff]   ;;  %v5867_v58 = vld [vmem:[%s7889_s8 + $0x620] ss:$28 sps:$4 sm:$0xff]  }
 0x426   : > { %4134 = vmatpush1.bf16.msra.mxu0 %v5795_v5  ;;  %4220 = vmatpush1.bf16.msra.mxu1 %v5798_v6  ;;  %v5864_v55 = vld [vmem:[%s7889_s8 + $0x5f0] ss:$28 sps:$4 sm:$0xff]   ;;  %v5869_v56 = vld [vmem:[%s7889_s8 + $0x624] ss:$28 sps:$4 sm:$0xff]   ;;  %v5875_v60 = vld [vmem:[%s7889_s8 + $0x65c] ss:$28 sps:$4 sm:$0xff]  }
 0x427   : > { %4165 = vmatprep.mubr.bf16.mxu0 %v7268_v4  ;;  %4251 = vmatprep.mubr.bf16.mxu1 %v7268_v4  ;;  %v5872_v57 = vld [vmem:[%s7889_s8 + $0x62c] ss:$28 sps:$4 sm:$0xff]   ;;  %v5878_v61 = vld [vmem:[%s7889_s8 + $0x664] ss:$28 sps:$4 sm:$0xff]   ;;  %v5873_v62 = vld [vmem:[%s7889_s8 + $0x658] ss:$28 sps:$4 sm:$0xff]  }
 0x428   : > { %4135 = vmatprep.subr.bf16.mxu0 %v5803_v7  ;;  %4221 = vmatprep.subr.bf16.mxu1 %v5806_v8  ;;  %v5870_v59 = vld [vmem:[%s7889_s8 + $0x628] ss:$28 sps:$4 sm:$0xff]   ;;  %v5876_v1 = vld [vmem:[%s7889_s8 + $0x660] ss:$28 sps:$4 sm:$0xff]   ;;  %v5881_v2 = vld [vmem:[%s7889_s8 + $0x694] ss:$28 sps:$4 sm:$0xff]  }
 0x429   : > { %v5884_v5 = vld [vmem:[%s7889_s8 + $0x69c] ss:$28 sps:$4 sm:$0xff]   ;;  %v5879_v6 = vld [vmem:[%s7889_s8 + $0x690] ss:$28 sps:$4 sm:$0xff]  }
 0x42a   : > { %4136 = vmatpush1.bf16.msra.mxu0 %v5801_v9  ;;  %4222 = vmatpush1.bf16.msra.mxu1 %v5804_v10  ;;  %v5882_v7 = vld [vmem:[%s7889_s8 + $0x698] ss:$28 sps:$4 sm:$0xff]   ;;  %v5887_v8 = vld [vmem:[%s7889_s8 + $0x6cc] ss:$28 sps:$4 sm:$0xff]  }
 0x42b   : > { %4137 = vmatprep.subr.bf16.mxu0 %v5809_v12  ;;  %4223 = vmatprep.subr.bf16.mxu1 %v5812_v13  ;;  %v5890_v9 = vld [vmem:[%s7889_s8 + $0x6d4] ss:$28 sps:$4 sm:$0xff]   ;;  %v5885_v10 = vld [vmem:[%s7889_s8 + $0x6c8] ss:$28 sps:$4 sm:$0xff]  }
 0x42c   : > { %v5888_v12 = vld [vmem:[%s7889_s8 + $0x6d0] ss:$28 sps:$4 sm:$0xff]  }
 0x42d   : > { %v5893_v13 = vld [vmem:[%s7889_s8 + $0x14] ss:$28 sps:$4 sm:$0xff]  }
 0x42e   : > { %4138 = vmatpush1.bf16.msra.mxu0 %v5807_v14  ;;  %4224 = vmatpush1.bf16.msra.mxu1 %v5810_v15  ;;  %v5894_v14 = vld [vmem:[%s7889_s8 + $0x1d8] ss:$28 sps:$4 sm:$0xff]   ;;  %v5891_v15 = vld [vmem:[%s7889_s8 + $0x10] ss:$28 sps:$4 sm:$0xff]  }
 0x42f   : > { %4139 = vmatprep.subr.bf16.mxu0 %v5815_v16  ;;  %4225 = vmatprep.subr.bf16.mxu1 %v5818_v17  ;;  %v5895_v16 = vld [vmem:[%s7889_s8 + $0x18] ss:$28 sps:$4 sm:$0xff]   ;;  %v5898_v17 = vld [vmem:[%s7889_s8 + $0x4c] ss:$28 sps:$4 sm:$0xff]  }
 0x432   : > { %4140 = vmatpush1.bf16.msra.mxu0 %v5813_v18  ;;  %4226 = vmatpush1.bf16.msra.mxu1 %v5816_v19  ;;  %v5899_v18 = vld [vmem:[%s7889_s8 + $0x210] ss:$28 sps:$4 sm:$0xff]   ;;  %v5896_v19 = vld [vmem:[%s7889_s8 + $0x48] ss:$28 sps:$4 sm:$0xff]  }
 0x433   : > { %4141 = vmatprep.subr.bf16.mxu0 %v5821_v20  ;;  %4227 = vmatprep.subr.bf16.mxu1 %v5824_v21  ;;  %v5900_v20 = vld [vmem:[%s7889_s8 + $0x50] ss:$28 sps:$4 sm:$0xff]   ;;  %v5903_v21 = vld [vmem:[%s7889_s8 + $0x84] ss:$28 sps:$4 sm:$0xff]  }
 0x436   : > { %4142 = vmatpush1.bf16.msra.mxu0 %v5819_v22  ;;  %4228 = vmatpush1.bf16.msra.mxu1 %v5822_v23  ;;  %v5904_v22 = vld [vmem:[%s7889_s8 + $0x248] ss:$28 sps:$4 sm:$0xff]   ;;  %v5901_v23 = vld [vmem:[%s7889_s8 + $0x80] ss:$28 sps:$4 sm:$0xff]  }
 0x437   : > { %4143 = vmatprep.subr.bf16.mxu0 %v5827_v24  ;;  %4229 = vmatprep.subr.bf16.mxu1 %v5830_v25  ;;  %v5908_v24 = vld [vmem:[%s7889_s8 + $0xbc] ss:$28 sps:$4 sm:$0xff]  }
 0x438   : > { %v5909_v25 = vld [vmem:[%s7889_s8 + $0x280] ss:$28 sps:$4 sm:$0xff]  }
 0x43a   : > { %4144 = vmatpush1.bf16.msra.mxu0 %v5825_v26  ;;  %4230 = vmatpush1.bf16.msra.mxu1 %v5828_v27  ;;  %v5906_v26 = vld [vmem:[%s7889_s8 + $0xb8] ss:$28 sps:$4 sm:$0xff]   ;;  %v5910_v27 = vld [vmem:[%s7889_s8 + $0xc0] ss:$28 sps:$4 sm:$0xff]  }
 0x43b   : > { %4145 = vmatprep.subr.bf16.mxu0 %v5833_v28  ;;  %4231 = vmatprep.subr.bf16.mxu1 %v5836_v29  ;;  %v5913_v28 = vld [vmem:[%s7889_s8 + $0xf4] ss:$28 sps:$4 sm:$0xff]  }
 0x43c   : > { %v5914_v29 = vld [vmem:[%s7889_s8 + $0x2b8] ss:$28 sps:$4 sm:$0xff]  }
 0x43e   : > { %4146 = vmatpush1.bf16.msra.mxu0 %v5831_v33  ;;  %4232 = vmatpush1.bf16.msra.mxu1 %v5834_v36  ;;  %v5911_v33 = vld [vmem:[%s7889_s8 + $0xf0] ss:$28 sps:$4 sm:$0xff]   ;;  %v5915_v36 = vld [vmem:[%s7889_s8 + $0xf8] ss:$28 sps:$4 sm:$0xff]  }
 0x43f   : > { %4147 = vmatprep.subr.bf16.mxu0 %v5839_v11  ;;  %4233 = vmatprep.subr.bf16.mxu1 %v5842_v37  ;;  %v5918_v11 = vld [vmem:[%s7889_s8 + $0x12c] ss:$28 sps:$4 sm:$0xff]  }
 0x440   : > { %v5919_v37 = vld [vmem:[%s7889_s8 + $0x2f0] ss:$28 sps:$4 sm:$0xff]  }
 0x442   : > { %4148 = vmatpush1.bf16.msra.mxu0 %v5837_v38  ;;  %4234 = vmatpush1.bf16.msra.mxu1 %v5840_v39  ;;  %v5916_v38 = vld [vmem:[%s7889_s8 + $0x128] ss:$28 sps:$4 sm:$0xff]   ;;  %v5920_v39 = vld [vmem:[%s7889_s8 + $0x130] ss:$28 sps:$4 sm:$0xff]  }
 0x443   : > { %4149 = vmatprep.subr.bf16.mxu0 %v5845_v40  ;;  %4235 = vmatprep.subr.bf16.mxu1 %v5848_v41  ;;  %v5923_v40 = vld [vmem:[%s7889_s8 + $0x164] ss:$28 sps:$4 sm:$0xff]  }
 0x444   : > { %v5924_v41 = vld [vmem:[%s7889_s8 + $0x328] ss:$28 sps:$4 sm:$0xff]  }
 0x446   : > { %4150 = vmatpush1.bf16.msra.mxu0 %v5843_v42  ;;  %4236 = vmatpush1.bf16.msra.mxu1 %v5846_v43  ;;  %v5921_v42 = vld [vmem:[%s7889_s8 + $0x160] ss:$28 sps:$4 sm:$0xff]   ;;  %v5925_v43 = vld [vmem:[%s7889_s8 + $0x168] ss:$28 sps:$4 sm:$0xff]  }
 0x447   : > { %4151 = vmatprep.subr.bf16.mxu0 %v5851_v44  ;;  %4237 = vmatprep.subr.bf16.mxu1 %v5854_v45  ;;  %v5928_v44 = vld [vmem:[%s7889_s8 + $0x19c] ss:$28 sps:$4 sm:$0xff]  }
 0x448   : > { %v5929_v45 = vld [vmem:[%s7889_s8 + $0x360] ss:$28 sps:$4 sm:$0xff]  }
 0x44a   : > { %4152 = vmatpush1.bf16.msra.mxu0 %v5849_v46  ;;  %4238 = vmatpush1.bf16.msra.mxu1 %v5852_v47  ;;  %v5926_v46 = vld [vmem:[%s7889_s8 + $0x198] ss:$28 sps:$4 sm:$0xff]   ;;  %v5930_v47 = vld [vmem:[%s7889_s8 + $0x1a0] ss:$28 sps:$4 sm:$0xff]  }
 0x44b   : > { %4153 = vmatprep.subr.bf16.mxu0 %v5857_v48  ;;  %4239 = vmatprep.subr.bf16.mxu1 %v5860_v49  ;;  %v5933_v48 = vld [vmem:[%s7889_s8 + $0x1d4] ss:$28 sps:$4 sm:$0xff]  }
 0x44c   : > { %v5934_v49 = vld [vmem:[%s7889_s8 + $0x558] ss:$28 sps:$4 sm:$0xff]  }
 0x44e   : > { %4154 = vmatpush1.bf16.msra.mxu0 %v5855_v50  ;;  %4240 = vmatpush1.bf16.msra.mxu1 %v5858_v51  ;;  %v5931_v50 = vld [vmem:[%s7889_s8 + $0x1d0] ss:$28 sps:$4 sm:$0xff]   ;;  %v5935_v51 = vld [vmem:[%s7889_s8 + $0x398] ss:$28 sps:$4 sm:$0xff]  }
 0x44f   : > { %4155 = vmatprep.subr.bf16.mxu0 %v5863_v52  ;;  %4241 = vmatprep.subr.bf16.mxu1 %v5866_v53  ;;  %v5938_v52 = vld [vmem:[%s7889_s8 + $0x20c] ss:$28 sps:$4 sm:$0xff]  }
 0x450   : > { %v5939_v53 = vld [vmem:[%s7889_s8 + $0x590] ss:$28 sps:$4 sm:$0xff]  }
 0x452   : > { %4156 = vmatpush1.bf16.msra.mxu0 %v5861_v54  ;;  %4242 = vmatpush1.bf16.msra.mxu1 %v5864_v55  ;;  %v5936_v54 = vld [vmem:[%s7889_s8 + $0x208] ss:$28 sps:$4 sm:$0xff]   ;;  %v5940_v55 = vld [vmem:[%s7889_s8 + $0x3d0] ss:$28 sps:$4 sm:$0xff]  }
 0x453   : > { %4157 = vmatprep.subr.bf16.mxu0 %v5869_v56  ;;  %4243 = vmatprep.subr.bf16.mxu1 %v5872_v57  ;;  %v5943_v56 = vld [vmem:[%s7889_s8 + $0x244] ss:$28 sps:$4 sm:$0xff]  }
 0x454   : > { %v5944_v57 = vld [vmem:[%s7889_s8 + $0x5c8] ss:$28 sps:$4 sm:$0xff]  }
 0x456   : > { %4158 = vmatpush1.bf16.msra.mxu0 %v5867_v58  ;;  %4244 = vmatpush1.bf16.msra.mxu1 %v5870_v59  ;;  %v5941_v58 = vld [vmem:[%s7889_s8 + $0x240] ss:$28 sps:$4 sm:$0xff]   ;;  %v5945_v59 = vld [vmem:[%s7889_s8 + $0x408] ss:$28 sps:$4 sm:$0xff]  }
 0x457   : > { %4159 = vmatprep.subr.bf16.mxu0 %v5875_v60  ;;  %4245 = vmatprep.subr.bf16.mxu1 %v5878_v61  ;;  %v5948_v60 = vld [vmem:[%s7889_s8 + $0x27c] ss:$28 sps:$4 sm:$0xff]  }
 0x458   : > { %v5949_v61 = vld [vmem:[%s7889_s8 + $0x600] ss:$28 sps:$4 sm:$0xff]  }
 0x45a   : > { %4160 = vmatpush1.bf16.msra.mxu0 %v5873_v62  ;;  %4246 = vmatpush1.bf16.msra.mxu1 %v5876_v1  ;;  %v5946_v62 = vld [vmem:[%s7889_s8 + $0x278] ss:$28 sps:$4 sm:$0xff]   ;;  %v5950_v1 = vld [vmem:[%s7889_s8 + $0x440] ss:$28 sps:$4 sm:$0xff]  }
 0x45b   : > { %4161 = vmatprep.subr.bf16.mxu0 %v5881_v2  ;;  %4247 = vmatprep.subr.bf16.mxu1 %v5884_v5  ;;  %v5953_v2 = vld [vmem:[%s7889_s8 + $0x2b4] ss:$28 sps:$4 sm:$0xff]  }
 0x45c   : > { %v5954_v5 = vld [vmem:[%s7889_s8 + $0x638] ss:$28 sps:$4 sm:$0xff]  }
 0x45e   : > { %4162 = vmatpush1.bf16.msra.mxu0 %v5879_v6  ;;  %4248 = vmatpush1.bf16.msra.mxu1 %v5882_v7  ;;  %v5951_v6 = vld [vmem:[%s7889_s8 + $0x2b0] ss:$28 sps:$4 sm:$0xff]   ;;  %v5955_v7 = vld [vmem:[%s7889_s8 + $0x478] ss:$28 sps:$4 sm:$0xff]  }
 0x45f   : > { %4163 = vmatprep.subr.bf16.mxu0 %v5887_v8  ;;  %4249 = vmatprep.subr.bf16.mxu1 %v5890_v9  ;;  %v5958_v8 = vld [vmem:[%s7889_s8 + $0x2ec] ss:$28 sps:$4 sm:$0xff]  }
 0x460   : > { %v5959_v9 = vld [vmem:[%s7889_s8 + $0x670] ss:$28 sps:$4 sm:$0xff]  }
 0x462   : > { %4164 = vmatpush1.bf16.msra.mxu0 %v5885_v10  ;;  %4250 = vmatpush1.bf16.msra.mxu1 %v5888_v12  ;;  %v5956_v10 = vld [vmem:[%s7889_s8 + $0x2e8] ss:$28 sps:$4 sm:$0xff]   ;;  %v5960_v12 = vld [vmem:[%s7889_s8 + $0x4b0] ss:$28 sps:$4 sm:$0xff]  }
 0x463   : > { %4262 = vmatprep.subr.bf16.mxu0 %v5893_v13  ;;  %5186 = vmatprep.subr.bf16.mxu1 %v5894_v14  ;;  %v5963_v13 = vld [vmem:[%s7889_s8 + $0x324] ss:$28 sps:$4 sm:$0xff]  }
 0x464   : > { %v5964_v14 = vld [vmem:[%s7889_s8 + $0x6a8] ss:$28 sps:$4 sm:$0xff]  }
 0x465   : > { %4166 = vmatmul.mubr.bf16.vlgmr.msra.gmra.mrb[8].mxu0 %v7264_v0  ;;  %4252 = vmatmul.mubr.bf16.vlgmr.msra.gmra.mrb[16].mxu1 %v7264_v0 }
 0x466   : > { %4263 = vmatpush1.bf16.msra.mxu0 %v5891_v15  ;;  %4294 = vmatprep.mubr.bf16.mxu0 %v7266_v3  ;;  %v5961_v15 = vld [vmem:[%s7889_s8 + $0x320] ss:$28 sps:$4 sm:$0xff]  }
 0x467   : > { %5187 = vmatpush3.bf16.msra.mxu1 %v5895_v16  ;;  %4380 = vmatprep.mubr.bf16.mxu1 %v7266_v3  ;;  %v5905_v3 = vld [vmem:[%s7889_s8 + $0x88] ss:$28 sps:$4 sm:$0xff]  }
 0x468   : > { %4264 = vmatprep.subr.bf16.mxu0 %v5898_v17  ;;  %5188 = vmatprep.subr.bf16.mxu1 %v5899_v18  ;;  %v5965_v16 = vld [vmem:[%s7889_s8 + $0x4e8] ss:$28 sps:$4 sm:$0xff]   ;;  %v5968_v17 = vld [vmem:[%s7889_s8 + $0x35c] ss:$28 sps:$4 sm:$0xff]  }
 0x469   : > { %v5969_v18 = vld [vmem:[%s7889_s8 + $0x6e0] ss:$28 sps:$4 sm:$0xff]  }
 0x46a   : > { %4265 = vmatpush1.bf16.msra.mxu0 %v5896_v19  ;;  %v5966_v19 = vld [vmem:[%s7889_s8 + $0x358] ss:$28 sps:$4 sm:$0xff]  }
 0x46b   : > { %5189 = vmatpush3.bf16.msra.mxu1 %v5900_v20  ;;  %4266 = vmatprep.subr.bf16.mxu0 %v5903_v21  ;;  %v5970_v20 = vld [vmem:[%s7889_s8 + $0x520] ss:$28 sps:$4 sm:$0xff]   ;;  %v5973_v21 = vld [vmem:[%s7889_s8 + $0x394] ss:$28 sps:$4 sm:$0xff]  }
 0x46c   : > { %5190 = vmatprep.subr.bf16.mxu1 %v5904_v22  ;;  %v5971_v22 = vld [vmem:[%s7889_s8 + $0x390] ss:$28 sps:$4 sm:$0xff]  }
 0x46e   : > { %4267 = vmatpush1.bf16.msra.mxu0 %v5901_v23  ;;  %v5976_v23 = vld [vmem:[%s7889_s8 + $0x3cc] ss:$28 sps:$4 sm:$0xff]  }
 0x46f   : > { %5191 = vmatpush3.bf16.msra.mxu1 %v5905_v3  ;;  %4268 = vmatprep.subr.bf16.mxu0 %v5908_v24  ;;  %v5974_v3 = vld [vmem:[%s7889_s8 + $0x3c8] ss:$28 sps:$4 sm:$0xff]  }
 0x470   : > { %5192 = vmatprep.subr.bf16.mxu1 %v5909_v25  ;;  %v5979_v24 = vld [vmem:[%s7889_s8 + $0x404] ss:$28 sps:$4 sm:$0xff]  }
 0x471   : > { %v5977_v25 = vld [vmem:[%s7889_s8 + $0x400] ss:$28 sps:$4 sm:$0xff]  }
 0x472   : > { %4269 = vmatpush1.bf16.msra.mxu0 %v5906_v26  ;;  %v5985_v26 = vld [vmem:[%s7889_s8 + $0x474] ss:$28 sps:$4 sm:$0xff]  }
 0x473   : > { %5193 = vmatpush3.bf16.msra.mxu1 %v5910_v27  ;;  %4270 = vmatprep.subr.bf16.mxu0 %v5913_v28  ;;  %v5983_v27 = vld [vmem:[%s7889_s8 + $0x470] ss:$28 sps:$4 sm:$0xff]  }
 0x474   : > { %5194 = vmatprep.subr.bf16.mxu1 %v5914_v29  ;;  %v5988_v28 = vld [vmem:[%s7889_s8 + $0x4ac] ss:$28 sps:$4 sm:$0xff]  }
 0x475   : > { %v5986_v29 = vld [vmem:[%s7889_s8 + $0x4a8] ss:$28 sps:$4 sm:$0xff]  }
 0x476   : > { %4271 = vmatpush1.bf16.msra.mxu0 %v5911_v33  ;;  %v5991_v33 = vld [vmem:[%s7889_s8 + $0x4e4] ss:$28 sps:$4 sm:$0xff]  }
 0x477   : > { %5195 = vmatpush3.bf16.msra.mxu1 %v5915_v36  ;;  %4272 = vmatprep.subr.bf16.mxu0 %v5918_v11  ;;  %v5989_v36 = vld [vmem:[%s7889_s8 + $0x4e0] ss:$28 sps:$4 sm:$0xff]  }
 0x478   : > { %5196 = vmatprep.subr.bf16.mxu1 %v5919_v37  ;;  %v5994_v11 = vld [vmem:[%s7889_s8 + $0x51c] ss:$28 sps:$4 sm:$0xff]  }
 0x479   : > { %v5992_v37 = vld [vmem:[%s7889_s8 + $0x518] ss:$28 sps:$4 sm:$0xff]  }
 0x47a   : > { %4273 = vmatpush1.bf16.msra.mxu0 %v5916_v38  ;;  %v5997_v38 = vld [vmem:[%s7889_s8 + $0x554] ss:$28 sps:$4 sm:$0xff]  }
 0x47b   : > { %5197 = vmatpush3.bf16.msra.mxu1 %v5920_v39  ;;  %4274 = vmatprep.subr.bf16.mxu0 %v5923_v40  ;;  %v5995_v39 = vld [vmem:[%s7889_s8 + $0x550] ss:$28 sps:$4 sm:$0xff]  }
 0x47c   : > { %5198 = vmatprep.subr.bf16.mxu1 %v5924_v41  ;;  %v6000_v40 = vld [vmem:[%s7889_s8 + $0x58c] ss:$28 sps:$4 sm:$0xff]  }
 0x47d   : > { %v5998_v41 = vld [vmem:[%s7889_s8 + $0x588] ss:$28 sps:$4 sm:$0xff]  }
 0x47e   : > { %4275 = vmatpush1.bf16.msra.mxu0 %v5921_v42  ;;  %v6003_v42 = vld [vmem:[%s7889_s8 + $0x5c4] ss:$28 sps:$4 sm:$0xff]  }
 0x47f   : > { %5199 = vmatpush3.bf16.msra.mxu1 %v5925_v43  ;;  %4276 = vmatprep.subr.bf16.mxu0 %v5928_v44  ;;  %v6001_v43 = vld [vmem:[%s7889_s8 + $0x5c0] ss:$28 sps:$4 sm:$0xff]  }
 0x480   : > { %5200 = vmatprep.subr.bf16.mxu1 %v5929_v45  ;;  %v6006_v44 = vld [vmem:[%s7889_s8 + $0x5fc] ss:$28 sps:$4 sm:$0xff]  }
 0x481   : > { %v6004_v45 = vld [vmem:[%s7889_s8 + $0x5f8] ss:$28 sps:$4 sm:$0xff]  }
 0x482   : > { %4277 = vmatpush1.bf16.msra.mxu0 %v5926_v46  ;;  %v6009_v46 = vld [vmem:[%s7889_s8 + $0x634] ss:$28 sps:$4 sm:$0xff]  }
 0x483   : > { %5201 = vmatpush3.bf16.msra.mxu1 %v5930_v47  ;;  %4278 = vmatprep.subr.bf16.mxu0 %v5933_v48  ;;  %v6007_v47 = vld [vmem:[%s7889_s8 + $0x630] ss:$28 sps:$4 sm:$0xff]  }
 0x484   : > { %5208 = vmatprep.subr.bf16.mxu1 %v5934_v49  ;;  %v6012_v48 = vld [vmem:[%s7889_s8 + $0x66c] ss:$28 sps:$4 sm:$0xff]  }
 0x485   : > { %v6010_v49 = vld [vmem:[%s7889_s8 + $0x668] ss:$28 sps:$4 sm:$0xff]  }
 0x486   : > { %4381 = vmatmul.mubr.bf16.vlgmr.msra.gmra.mrb[20].mxu1 %v7262_v63  ;;  %4279 = vmatpush1.bf16.msra.mxu0 %v5931_v50  ;;  %v6015_v50 = vld [vmem:[%s7889_s8 + $0x6a4] ss:$28 sps:$4 sm:$0xff]  }
 0x487   : > { %5209 = vmatpush3.bf16.msra.mxu1 %v5935_v51  ;;  %4421 = vmatprep.mubr.bf16.mxu1 %v7268_v4  ;;  %v6013_v51 = vld [vmem:[%s7889_s8 + $0x6a0] ss:$28 sps:$4 sm:$0xff]  }
 0x488   : > { %4280 = vmatprep.subr.bf16.mxu0 %v5938_v52  ;;  %5210 = vmatprep.subr.bf16.mxu1 %v5939_v53  ;;  %v6018_v52 = vld [vmem:[%s7889_s8 + $0x6dc] ss:$28 sps:$4 sm:$0xff]  }
 0x489   : > { %v6016_v53 = vld [vmem:[%s7889_s8 + $0x6d8] ss:$28 sps:$4 sm:$0xff]  }
 0x48a   : > { %4281 = vmatpush1.bf16.msra.mxu0 %v5936_v54  ;;  %v7763_v54 = vld [vmem:[%s7890_s9] sm:$0x7f] }
 0x48b   : > { %5211 = vmatpush3.bf16.msra.mxu1 %v5940_v55  ;;  %4282 = vmatprep.subr.bf16.mxu0 %v5943_v56  ;;  %v2906_v55 = vrot.slane %v7763_v54, %v6926_v31  ;;  %v2914_v56 = vrot.slane %v7763_v54, %v6929_v32 }
 0x48c   : > { %5212 = vmatprep.subr.bf16.mxu1 %v5944_v57  ;;  %v2910_v57 = vrot.slane %v7763_v54, %v6935_v34 }
 0x48e   : > { %4283 = vmatpush1.bf16.msra.mxu0 %v5941_v58  ;;  %v2918_v58 = vrot.slane %v7763_v54, %v6938_v35 }
 0x48f   : > { %5213 = vmatpush3.bf16.msra.mxu1 %v5945_v59  ;;  %4284 = vmatprep.subr.bf16.mxu0 %v5948_v60 }
 0x490   : > { %5214 = vmatprep.subr.bf16.mxu1 %v5949_v61 }
 0x492   : > { %4285 = vmatpush1.bf16.msra.mxu0 %v5946_v62 }
 0x493   : > { %5215 = vmatpush3.bf16.msra.mxu1 %v5950_v1  ;;  %4286 = vmatprep.subr.bf16.mxu0 %v5953_v2 }
 0x494   : > { %5216 = vmatprep.subr.bf16.mxu1 %v5954_v5 }
 0x496   : > { %4287 = vmatpush1.bf16.msra.mxu0 %v5951_v6 }
 0x497   : > { %5217 = vmatpush3.bf16.msra.mxu1 %v5955_v7  ;;  %4288 = vmatprep.subr.bf16.mxu0 %v5958_v8 }
 0x498   : > { %5218 = vmatprep.subr.bf16.mxu1 %v5959_v9 }
 0x49a   : > { %4289 = vmatpush1.bf16.msra.mxu0 %v5956_v10 }
 0x49b   : > { %5219 = vmatpush3.bf16.msra.mxu1 %v5960_v12  ;;  %4290 = vmatprep.subr.bf16.mxu0 %v5963_v13 }
 0x49c   : > { %5220 = vmatprep.subr.bf16.mxu1 %v5964_v14 }
 0x49e   : > { %4291 = vmatpush1.bf16.msra.mxu0 %v5961_v15 }
 0x49f   : > { %5221 = vmatpush3.bf16.msra.mxu1 %v5965_v16  ;;  %4292 = vmatprep.subr.bf16.mxu0 %v5968_v17 }
 0x4a0   : > { %5222 = vmatprep.subr.bf16.mxu1 %v5969_v18 }
 0x4a2   : > { %4293 = vmatpush1.bf16.msra.mxu0 %v5966_v19 }
 0x4a3   : > { %5223 = vmatpush3.bf16.msra.mxu1 %v5970_v20  ;;  %4305 = vmatprep.subr.bf16.mxu0 %v5973_v21 }
 0x4a5   : > { %4295 = vmatmul.mubr.bf16.vlgmr.msra.gmra.mrb[12].mxu0 %v7262_v63  ;;  %v5982_v63 = vld [vmem:[%s7889_s8 + $0x43c] ss:$28 sps:$4 sm:$0xff]  }
 0x4a6   : > { %4422 = vmatmul.mubr.bf16.vlgmr.msra.gmra.mrb[24].mxu1 %v7264_v0  ;;  %4306 = vmatpush1.bf16.msra.mxu0 %v5971_v22 }
 0x4a7   : > { %4337 = vmatprep.mubr.bf16.mxu0 %v7268_v4  ;;  %4307 = vmatprep.subr.bf16.mxu0 %v5976_v23  ;;  %v5980_v4 = vld [vmem:[%s7889_s8 + $0x438] ss:$28 sps:$4 sm:$0xff]  }
 0x4aa   : > { %4308 = vmatpush1.bf16.msra.mxu0 %v5974_v3 }
 0x4ab   : > { %4309 = vmatprep.subr.bf16.mxu0 %v5979_v24 }
 0x4ae   : > { %4310 = vmatpush1.bf16.msra.mxu0 %v5977_v25 }
 0x4af   : > { %4311 = vmatprep.subr.bf16.mxu0 %v5982_v63 }
 0x4b2   : > { %4312 = vmatpush1.bf16.msra.mxu0 %v5980_v4 }
 0x4b3   : > { %4313 = vmatprep.subr.bf16.mxu0 %v5985_v26 }
 0x4b6   : > { %4314 = vmatpush1.bf16.msra.mxu0 %v5983_v27 }
 0x4b7   : > { %4315 = vmatprep.subr.bf16.mxu0 %v5988_v28 }
 0x4ba   : > { %4316 = vmatpush1.bf16.msra.mxu0 %v5986_v29 }
 0x4bb   : > { %4317 = vmatprep.subr.bf16.mxu0 %v5991_v33 }
 0x4be   : > { %4318 = vmatpush1.bf16.msra.mxu0 %v5989_v36 }
 0x4bf   : > { %4319 = vmatprep.subr.bf16.mxu0 %v5994_v11 }
 0x4c2   : > { %4320 = vmatpush1.bf16.msra.mxu0 %v5992_v37 }
 0x4c3   : > { %4321 = vmatprep.subr.bf16.mxu0 %v5997_v38 }
 0x4c6   : > { %4322 = vmatpush1.bf16.msra.mxu0 %v5995_v39 }
 0x4c7   : > { %4323 = vmatprep.subr.bf16.mxu0 %v6000_v40 }
 0x4ca   : > { %4324 = vmatpush1.bf16.msra.mxu0 %v5998_v41 }
 0x4cb   : > { %4325 = vmatprep.subr.bf16.mxu0 %v6003_v42 }
 0x4ce   : > { %4326 = vmatpush1.bf16.msra.mxu0 %v6001_v43 }
 0x4cf   : > { %4327 = vmatprep.subr.bf16.mxu0 %v6006_v44 }
 0x4d2   : > { %4328 = vmatpush1.bf16.msra.mxu0 %v6004_v45 }
 0x4d3   : > { %4329 = vmatprep.subr.bf16.mxu0 %v6009_v46 }
 0x4d6   : > { %4330 = vmatpush1.bf16.msra.mxu0 %v6007_v47 }
 0x4d7   : > { %4331 = vmatprep.subr.bf16.mxu0 %v6012_v48 }
 0x4da   : > { %4332 = vmatpush1.bf16.msra.mxu0 %v6010_v49 }
 0x4db   : > { %4333 = vmatprep.subr.bf16.mxu0 %v6015_v50 }
 0x4de   : > { %4334 = vmatpush1.bf16.msra.mxu0 %v6013_v51 }
 0x4df   : > { %4335 = vmatprep.subr.bf16.mxu0 %v6018_v52 }
 0x4e2   : > { %4336 = vmatpush1.bf16.msra.mxu0 %v6016_v53 }
 0x4e5   : > { %4338 = vmatmul.mubr.bf16.vlgmr.msra.gmra.mrb[12].mxu0 %v7264_v0 }
 0x538   : > { %v4167_v59 = vpop.f32.mrb[8].mxu0  ;;  %v4253_v60 = vpop.f32.mrb[16].mxu1 }
 0x539   : > { %v5238_v0 = vadd.f32 %v4167_v59, %v2906_v55  ;;  %v5242_v61 = vadd.f32 %v4253_v60, %v2914_v56  ;;  %v4169_v62 = vpop.f32.mrb[9].mxu0  ;;  %v4255_v1 = vpop.f32.mrb[17].mxu1 }
 0x53a   : > { %v5239_v2 = vadd.f32 %v4169_v62, %v2910_v57  ;;  %v5243_v5 = vadd.f32 %v4255_v1, %v2918_v58  ;;  %v4171_v6 = vpop.f32.mrb[10].mxu0  ;;  %v4257_v7 = vpop.f32.mrb[18].mxu1 }
 0x53b   : > { %v4430_v31 = vmul.f32 0.5, %v5238_v0  ;;  %v4432_v8 = vmul.f32 0.5, %v5242_v61  ;;  %v5240_v9 = vadd.f32 %v4171_v6, %v2906_v55  ;;  %v5244_v32 = vadd.f32 %v4257_v7, %v2914_v56  ;;  %v4173_v10 = vpop.f32.mrb[11].mxu0  ;;  %v4259_v12 = vpop.f32.mrb[19].mxu1 }
 0x53c   : > { %v4431_v34 = vmul.f32 0.5, %v5239_v2  ;;  %v4433_v13 = vmul.f32 0.5, %v5243_v5  ;;  %v5241_v35 = vadd.f32 %v4173_v10, %v2910_v57  ;;  %v5245_v14 = vadd.f32 %v4259_v12, %v2918_v58 }
 0x53d   : > { %6023 = vtanh.f32 %v4430_v31  ;;  %v4437_v15 = vmul.f32 0.5, %v5240_v9  ;;  %v4439_v16 = vmul.f32 0.5, %v5244_v32 }
 0x53e   : > { %6025 = vtanh.f32 %v4432_v8  ;;  %v4438_v17 = vmul.f32 0.5, %v5241_v35  ;;  %v4440_v18 = vmul.f32 0.5, %v5245_v14 }
 0x53f   : > { %6027 = vtanh.f32 %v4431_v34 }
 0x540   : > { %6029 = vtanh.f32 %v4433_v13 }
 0x541   : > { %6031 = vtanh.f32 %v4437_v15 }
 0x542   : > { %6033 = vtanh.f32 %v4439_v16 }
 0x543   : > { %6035 = vtanh.f32 %v4438_v17 }
 0x544   : > { %6037 = vtanh.f32 %v4440_v18 }
 0x547   : > { %v6024_v19 = vpop.eup %6023 }
 0x548   : > { %v6026_v20 = vpop.eup %6025  ;;  %v4458_v21 = vmul.f32 0.5, %v6024_v19 }
 0x549   : > { %v6028_v22 = vpop.eup %6027  ;;  %v4460_v23 = vmul.f32 0.5, %v6026_v20 }
 0x54a   : > { %v6030_v3 = vpop.eup %6029  ;;  %v4472_v24 = vadd.f32 0.5, %v4458_v21  ;;  %v4459_v25 = vmul.f32 0.5, %v6028_v22 }
 0x54b   : > { %v6032_v63 = vpop.eup %6031  ;;  %v4474_v4 = vadd.f32 0.5, %v4460_v23  ;;  %v4461_v26 = vmul.f32 0.5, %v6030_v3 }
 0x54c   : > { %v6034_v27 = vpop.eup %6033  ;;  %4486 = vst [vmem:[%s7774_s14] sm:$0xff] %v4472_v24  ;;  %v4473_v28 = vadd.f32 0.5, %v4459_v25  ;;  %v4465_v29 = vmul.f32 0.5, %v6032_v63 }
 0x54d   : > { %v6036_v33 = vpop.eup %6035  ;;  %4488 = vst [vmem:[%s7774_s14 + $0x10] sm:$0xff] %v4474_v4  ;;  %v4475_v36 = vadd.f32 0.5, %v4461_v26  ;;  %v4467_v11 = vmul.f32 0.5, %v6034_v27 }
 0x54e   : > { %v6038_v37 = vpop.eup %6037  ;;  %4487 = vst [vmem:[%s7774_s14 + $0x8] sm:$0xff] %v4473_v28  ;;  %v4479_v38 = vadd.f32 0.5, %v4465_v29  ;;  %v4466_v39 = vmul.f32 0.5, %v6036_v33 }
 0x54f   : > { %4489 = vst [vmem:[%s7774_s14 + $0x18] sm:$0xff] %v4475_v36  ;;  %v4481_v40 = vadd.f32 0.5, %v4467_v11  ;;  %v4468_v41 = vmul.f32 0.5, %v6038_v37 }
 0x550   : > { %4493 = vst [vmem:[%s7774_s14 + $0x38] sm:$0xff] %v4479_v38  ;;  %v4480_v42 = vadd.f32 0.5, %v4466_v39 }
 0x551   : > { %4495 = vst [vmem:[%s7774_s14 + $0x48] sm:$0xff] %v4481_v40  ;;  %v4482_v43 = vadd.f32 0.5, %v4468_v41 }
 0x552   : > { %4494 = vst [vmem:[%s7774_s14 + $0x40] sm:$0xff] %v4480_v42 }
 0x553   : > { %4496 = vst [vmem:[%s7774_s14 + $0x50] sm:$0xff] %v4482_v43 }
 0x554   : > { %6064 = shalt.err (!%p6061_p3)
}
 0x555   : > { %s6065_s12 = scalar_lea.hbm %s7788_s24, 256  ;;  %s6069_s22 = scalar_lea.hbm %s7892_s11, 512 }
 0x556   : > { %p6066_p4 = scmp.ne.s32.totalorder %s7788_s24, %s6065_s12  ;;  %p6070_p9 = scmp.lt.u32.totalorder %s7788_s24, %s7892_s11 }
 0x557   : > { %p6071_p10 = scmp.lt.u32.totalorder %s6069_s22, %s6065_s12  ;;  %p6073_p12 = scmp.lt.u32.totalorder %s6065_s12, %s7788_s24 }
 0x558   : > { %p6067_p7 = pnand %p6066_p4, %p6253_p5 }
 0x559   : > { %p6072_p11 = por %p6071_p10, %p6070_p9 }
 0x55a   : > { %p6068_p8 = pneg %p6067_p7 }
 0x55b   : > { %p6074_p13 = por %p6073_p12, %p6072_p11 }
 0x55d   : > { %p6075_p0 = pnand %p6074_p13, %p6068_p8 }
 0x55f   : > { %6078 = shalt.err (!%p6075_p0)
}
 0x560   : > { %s6150_s29 = smov 128   ;;  %s6151_s30 = smov 8   ;;  %v5202_v44 = vpop.f32.mrb[20].mxu1  ;;  %v2929_v50 = vsub.s32 6, %v6923_v30  ;;  %v2921_v9 = vsub.s32 4, %v6923_v30  ;;  %v2925_v32 = vsub.s32 5, %v6923_v30 }
 0x561   : > { %5290 = dma.vmem_to_hbm [thread:$0]  (%p6253_p5), %s7790_s15, 256, %s7788_s24, %s4508_s26, %s6150_s29, %s6150_s29, %s6151_s30   ;;  %v5203_v45 = vpop.f32.mrb[21].mxu1 }
 0x562   : > { %v5204_v46 = vadd.f32 %v5203_v45, %v5202_v44  ;;  %v5205_v47 = vpop.f32.mrb[22].mxu1  ;;  %v2930_v51 = vrot.slane %v7763_v54, %v2929_v50  ;;  %v2922_v10 = vrot.slane %v7763_v54, %v2921_v9  ;;  %v2926_v12 = vrot.slane %v7763_v54, %v2925_v32  ;;  %s4522_s15 = sshll.u32 %s7774_s14, 4  ;;  %s5288_s24 = smul.u32 1792, %s6236_s21  ;;  %s7829_s15 = int_to_ptr.vmem [resolvable:$true] %s4522_s15 }
 0x563   : > { %v5206_v48 = vpop.f32.mrb[23].mxu1  ;;  %s4503_s21 = scalar_lea.sflag [#allocation3], %s7017_s23  ;;  %s6079_s16 = scalar_lea.vmem %s7829_s15, 1792 }
 0x564   : > { %v5207_v49 = vadd.f32 %v5206_v48, %v5205_v47  ;;  %v4383_v55 = vadd.f32 %v5204_v46, %v2930_v51  ;;  %s7836_s19 = scalar_lea.hbm %s7891_s10, %s5288_s24  ;;  %p6080_p1 = scmp.ne.s32.totalorder %s7829_s15, %s6079_s16 }
 0x565   : > { %s6152_s22 = smov [#allocation2]  }
 0x566   : > { %v4386_v59 = vadd.f32 %v5207_v49, %v2930_v51  ;;  %p6081_p2 = pnand %p6080_p1, %p6253_p5  ;;  %s6083_s13 = sshll.u32 %s6152_s22, 4  ;;  %s6084_s13 = int_to_ptr.vmem [resolvable:$false] %s6083_s13 }
 0x567   : > { %s6085_s25 = scalar_lea.vmem %s6084_s13, 3584  ;;  %p6086_p4 = scmp.lt.s32.totalorder %s7829_s15, %s6084_s13 }
 0x568   : > { %p6082_p3 = pneg %p6081_p2  ;;  %p6087_p7 = scmp.lt.s32.totalorder %s6085_s25, %s6079_s16 }
 0x56a   : > { %p6088_p8 = por %p6087_p7, %p6086_p4 }
 0x56c   : > { %p6089_p9 = pnand %p6088_p8, %p6082_p3 }
 0x579   : > { %v5224_v52 = vpop.f32.mrb[24].mxu1 }
 0x57a   : > { %v5225_v53 = vpop.f32.mrb[25].mxu1 }
 0x57b   : > { %v5226_v56 = vadd.f32 %v5225_v53, %v5224_v52  ;;  %v5227_v57 = vpop.f32.mrb[26].mxu1 }
 0x57c   : > { %v5228_v58 = vpop.f32.mrb[27].mxu1 }
 0x57d   : > { %v4424_v60 = vadd.f32 %v5226_v56, %v4383_v55  ;;  %v5229_v0 = vadd.f32 %v5228_v58, %v5227_v57 }
 0x57f   : > { %v4436_v61 = vmul.f32 0.5, %v4424_v60  ;;  %v4427_v62 = vadd.f32 %v5229_v0, %v4386_v59 }
 0x581   : > { %6039 = vtanh.f32 %v4436_v61  ;;  %v4443_v1 = vmul.f32 0.5, %v4427_v62 }
 0x583   : > { %6041 = vtanh.f32 %v4443_v1 }
 0x58b   : > { %v6040_v2 = vpop.eup %6039 }
 0x58c   : > { %v4464_v5 = vmul.f32 0.5, %v6040_v2 }
 0x58d   : > { %v6042_v6 = vpop.eup %6041 }
 0x58e   : > { %v4478_v7 = vadd.f32 0.5, %v4464_v5  ;;  %v4471_v31 = vmul.f32 0.5, %v6042_v6 }
 0x590   : > { %4492 = vst.msk [vmem:[%s7774_s14 + $0x30] sm:$0xff] %vm1667_vm0, %v4478_v7  ;;  %v4485_v8 = vadd.f32 0.5, %v4471_v31 }
 0x592   : > { %4499 = vst.msk [vmem:[%s7774_s14 + $0x68] sm:$0xff] %vm1667_vm0, %v4485_v8 }
 0x5b8   : > { %v4339_v34 = vpop.f32.mrb[12].mxu0 }
 0x5b9   : > { %v5246_v13 = vadd.f32 %v4339_v34, %v2922_v10  ;;  %v4341_v35 = vpop.f32.mrb[13].mxu0 }
 0x5ba   : > { %v5247_v14 = vadd.f32 %v4341_v35, %v2926_v12  ;;  %v4343_v15 = vpop.f32.mrb[14].mxu0 }
 0x5bb   : > { %v4434_v16 = vmul.f32 0.5, %v5246_v13  ;;  %v5248_v17 = vadd.f32 %v4343_v15, %v2922_v10  ;;  %v4345_v18 = vpop.f32.mrb[15].mxu0 }
 0x5bc   : > { %v4435_v19 = vmul.f32 0.5, %v5247_v14  ;;  %v5249_v20 = vadd.f32 %v4345_v18, %v2926_v12 }
 0x5bd   : > { %6043 = vtanh.f32 %v4434_v16  ;;  %v4441_v21 = vmul.f32 0.5, %v5248_v17 }
 0x5be   : > { %6045 = vtanh.f32 %v4435_v19  ;;  %v4442_v30 = vmul.f32 0.5, %v5249_v20 }
 0x5bf   : > { %6047 = vtanh.f32 %v4441_v21 }
 0x5c0   : > { %6049 = vtanh.f32 %v4442_v30 }
 0x5c7   : > { %v6044_v54 = vpop.eup %6043 }
 0x5c8   : > { %v6046_v22 = vpop.eup %6045  ;;  %v4462_v23 = vmul.f32 0.5, %v6044_v54 }
 0x5c9   : > { %v6048_v3 = vpop.eup %6047  ;;  %v4463_v24 = vmul.f32 0.5, %v6046_v22 }
 0x5ca   : > { %v6050_v25 = vpop.eup %6049  ;;  %v4476_v63 = vadd.f32 0.5, %v4462_v23  ;;  %v4469_v4 = vmul.f32 0.5, %v6048_v3 }
 0x5cb   : > { %v4477_v26 = vadd.f32 0.5, %v4463_v24  ;;  %v4470_v27 = vmul.f32 0.5, %v6050_v25 }
 0x5cc   : > { %4490 = vst [vmem:[%s7774_s14 + $0x20] sm:$0xff] %v4476_v63  ;;  %v4483_v28 = vadd.f32 0.5, %v4469_v4 }
 0x5cd   : > { %4491 = vst [vmem:[%s7774_s14 + $0x28] sm:$0xff] %v4477_v26  ;;  %v4484_v29 = vadd.f32 0.5, %v4470_v27 }
 0x5ce   : > { %4497 = vst [vmem:[%s7774_s14 + $0x58] sm:$0xff] %v4483_v28 }
 0x5cf   : > { %4498 = vst [vmem:[%s7774_s14 + $0x60] sm:$0xff] %v4484_v29 }
 0x5d0   : > { %6092 = shalt.err (!%p6089_p9)
}
 0x5d1   : > { %s6093_s14 = scalar_lea.hbm %s7836_s19, 1792  ;;  %s6097_s24 = scalar_lea.hbm %s7891_s10, 3584 }
 0x5d2   : > { %p6094_p10 = scmp.ne.s32.totalorder %s7836_s19, %s6093_s14  ;;  %p6098_p13 = scmp.lt.u32.totalorder %s7836_s19, %s7891_s10 }
 0x5d3   : > { %p6099_p0 = scmp.lt.u32.totalorder %s6097_s24, %s6093_s14  ;;  %p6101_p2 = scmp.lt.u32.totalorder %s6093_s14, %s7836_s19 }
 0x5d4   : > { %p6095_p11 = pnand %p6094_p10, %p6253_p5 }
 0x5d5   : > { %p6100_p1 = por %p6099_p0, %p6098_p13 }
 0x5d6   : > { %p6096_p12 = pneg %p6095_p11 }
 0x5d7   : > { %p6102_p3 = por %p6101_p2, %p6100_p1 }
 0x5d9   : > { %p6103_p4 = pnand %p6102_p3, %p6096_p12 }
 0x5db   : > { %6106 = shalt.err (!%p6103_p4)
}
 0x5dc   : > { %s6153_s16 = smov 896   ;;  %s6154_s22 = smov 56  }
 0x5dd   : > { %5289 = dma.vmem_to_hbm [thread:$0]  (%p6253_p5), %s7829_s15, 1792, %s7836_s19, %s4503_s21, %s6153_s16, %s6153_s16, %s6154_s22  }
 0x5de PF: > { %p5300_p7 = scmp.ge.s32.totalorder %s6145_s20, 2  ;;  %s4553_s13 = sand.u32 1, %s6133_s17  }
 0x5df   : > { %s4554_s25 = scalar_lea.sflag [#allocation3], %s4553_s13 }
 0x5e0   : > { %p5294_p8 = pnand %p5300_p7, %p6257_p6 }
 0x5e2   : > { %6124 = dma.done.wait (!%p5294_p8), %s4554_s25, 1792  }
 0x5e3   : > { %6126 = vsyncadd (!%p5294_p8), %s4554_s25, 4294965504  ;;  %s4563_s14 = scalar_lea.sflag [#allocation5], %s4553_s13 }
 0x5e4   : > { %6128 = dma.done.wait (!%p5294_p8), %s4563_s14, 256  }
 0x5e5   : > { %6130 = vsyncadd (!%p5294_p8), %s4563_s14, 4294967040  ;;  %s7901_s20 = sld [smem:[#allocation9_spill]]  ;;  %s7902_s29 = sld [smem:[#allocation8_spill]] }
 0x5e6   : > { %s7903_s19 = sld [smem:[#allocation10_spill]]  ;;  %s7904_s17 = smov %s6137_s18 }
 0x5eb   : > { %p25_p5 = scmp.ge.s32.totalorder %s7901_s20, 4   ;;  %s7905_s18 = smov %s7902_s29 }
 0x5ed   :  { %27 = sbr.rel (!%p25_p5) target bundleno = 5 (0x5), region = 115 }
 0x5f4   :  { %4568 = vsyncpa [#allocation3], 1 }
 0x5f5   :  { %4570 = vsyncpa [#allocation3 + $0x1], 1 }
 0x5f6   :  { %4571 = vsyncpa [#allocation5], 1 }
 0x5f7   :  { %4573 = vsyncpa [#allocation5 + $0x1], 1 }

</bundles_post_ra>
